<compile_context>
chip_gen: v5e
topology: v5e:2x2
jax: 0.10.0
libtpu: 0.0.40
codegen_flags: <defaults>
</compile_context>

<pallas_src>
import jax
import jax.numpy as jnp
from jax import lax
from jax.experimental import pallas as pl
from jax.experimental.pallas import tpu as pltpu

NEG_SLOPE = 0.01
BN_EPS = 1e-5
LANE = 128          # lane width: pad hidden to a multiple of this
ROW_PAD = 128       # pad node counts to multiples of 128 (lane-dense A, dense MXU K tiles)


def _round_up(n, m):
    return ((n + m - 1) // m) * m


# --------------------------------------------------------------------------------------
# BatchNorm1d (training-mode batch stats, biased variance) + leaky_relu.
# Requires padded rows of `x` to be exactly zero (guaranteed by construction: zero-padded
# seeds, zero adjacency rows for padded dst nodes, and the output row mask below).
# Single-pass statistics; only the *output* is masked so padded rows stay exactly zero
# for the next block's root-weight term.  Pure jnp/lax -> usable in kernel and reference.
# --------------------------------------------------------------------------------------
def _bn_lrelu(x, n_real, gamma, beta):
    n_pad = x.shape[0]
    inv_n = 1.0 / float(n_real)
    mean = jnp.sum(x, axis=0, keepdims=True) * inv_n
    ex2 = jnp.sum(x * x, axis=0, keepdims=True) * inv_n
    var = jnp.maximum(ex2 - mean * mean, 0.0)
    y = (x - mean) * lax.rsqrt(var + BN_EPS) * gamma + beta
    y = jnp.where(y >= 0.0, y, NEG_SLOPE * y)
    if n_pad > n_real:
        rows = lax.broadcasted_iota(jnp.int32, (n_pad, 1), 0)
        y = jnp.where(rows < n_real, y, 0.0)
    return y


# --------------------------------------------------------------------------------------
# Pallas kernel: one grid step == one HeteroConv + BatchNorm + leaky_relu block.
# The bf16 outputs (constant block index) double as the cross-block activation carry.
# --------------------------------------------------------------------------------------
def _make_block_kernel(H, nh_real, nf_real):
    def kernel(x_host_hbm, x_flow_hbm,
               a_sends_hbm, a_prec_hbm, a_rev_hbm, a_reach_hbm,
               w_flow_ref, w_host_ref, gb_ref,
               out_host_ref, out_flow_ref,
               a_sends_v, a_prec_v, a_rev_v, a_reach_v, sem):
        b = pl.program_id(0)

        # Block 0: one-time DMAs. Adjacencies -> single-buffered resident VMEM scratch,
        # seed features -> straight into the output windows (= the activation carry).
        @pl.when(b == 0)
        def _seed():
            copies = [
                pltpu.make_async_copy(a_sends_hbm, a_sends_v, sem.at[0]),
                pltpu.make_async_copy(a_prec_hbm, a_prec_v, sem.at[1]),
                pltpu.make_async_copy(a_rev_hbm, a_rev_v, sem.at[2]),
                pltpu.make_async_copy(a_reach_hbm, a_reach_v, sem.at[3]),
                pltpu.make_async_copy(x_host_hbm, out_host_ref, sem.at[4]),
                pltpu.make_async_copy(x_flow_hbm, out_flow_ref, sem.at[5]),
            ]
            for c in copies:
                c.start()
            for c in copies:
                c.wait()

        x_host = out_host_ref[...]                       # [nh_pad, H] bf16 carry
        x_flow = out_flow_ref[...]                       # [nf_pad, H] bf16 carry

        # Packed per-block weights (bf16), streamed / double-buffered by the pipeline:
        #   w_flow = [Wl_prec | Wl_rev | Wl_reach | 0.5*(Wr_sends + Wr_prec)]   [H, 4H]
        #   w_host = [Wl_sends | 0.5*(Wr_rev + Wr_reach)]                       [H, 2H]
        w_flow = w_flow_ref[0]
        w_host = w_host_ref[0]
        gb = gb_ref[0]                                   # [8, H] f32 (row0=gamma, row1=beta)
        gamma = gb[0:1, :]
        beta = gb[1:2, :]

        # One lane-dense MXU matmul per source node type (lane width 4H / 2H).
        y_f = jnp.dot(x_flow, w_flow, preferred_element_type=jnp.float32)   # [nf_pad, 4H]
        y_h = jnp.dot(x_host, w_host, preferred_element_type=jnp.float32)   # [nh_pad, 2H]

        bf16 = jnp.bfloat16
        # Adjacencies already carry the HeteroConv 0.5 'mean' factor; the averaged root
        # weights sit in the packed weight tails.  SAGE biases are dropped: constant
        # per-feature shifts are exactly cancelled by training-mode BatchNorm.
        flow_pre = (
            jnp.dot(a_sends_v[...], y_h[:, 0:H].astype(bf16),
                    preferred_element_type=jnp.float32)
            + jnp.dot(a_prec_v[...], y_f[:, 0:H].astype(bf16),
                      preferred_element_type=jnp.float32)
            + y_f[:, 3 * H:4 * H])
        host_pre = (
            jnp.dot(a_rev_v[...], y_f[:, H:2 * H].astype(bf16),
                    preferred_element_type=jnp.float32)
            + jnp.dot(a_reach_v[...], y_f[:, 2 * H:3 * H].astype(bf16),
                      preferred_element_type=jnp.float32)
            + y_h[:, H:2 * H])

        out_flow_ref[...] = _bn_lrelu(flow_pre, nf_real, gamma, beta).astype(bf16)
        out_host_ref[...] = _bn_lrelu(host_pre, nh_real, gamma, beta).astype(bf16)

    return kernel


def _vmem_budget_bytes(nh_pad, nf_pad, H):
    """Rough VMEM estimate: resident bf16 adjacencies + carries + streamed weights +
    f32 intermediates, with 1.5x slack.  Clamped to [32 MiB, 96 MiB]."""
    adj = 2 * (nf_pad * nh_pad + nf_pad * nf_pad + 2 * nh_pad * nf_pad)      # bf16, single buffer
    carry = 2 * 2 * (nh_pad + nf_pad) * H                                    # bf16 out windows (x2 safety)
    weights = 2 * 2 * (H * 4 * H + H * 2 * H) + 2 * 4 * 8 * H                # double-buffered bf16 + gb f32
    work = 4 * (nf_pad * 4 * H + nh_pad * 2 * H + 3 * (nf_pad + nh_pad) * H)  # f32 intermediates
    est = int(1.5 * (adj + carry + weights + work))
    return min(96 * 1024 * 1024, max(32 * 1024 * 1024, est))


def run_hetero_blocks(prep):
    H = prep["H_pad"]
    nh_pad, nf_pad = prep["nh_pad"], prep["nf_pad"]
    nh_real, nf_real = prep["nh_real"], prep["nf_real"]
    num_blocks = prep["w_flow_stack"].shape[0]

    kernel = _make_block_kernel(H, nh_real, nf_real)

    out_host, out_flow = pl.pallas_call(
        kernel,
        out_shape=(jax.ShapeDtypeStruct((nh_pad, H), jnp.bfloat16),
                   jax.ShapeDtypeStruct((nf_pad, H), jnp.bfloat16)),
        grid_spec=pltpu.PrefetchScalarGridSpec(
            num_scalar_prefetch=0,
            grid=(num_blocks,),
            in_specs=[
                # seed features + adjacencies: raw HBM refs, DMA'd once at block 0
                pl.BlockSpec(memory_space=pl.ANY),       # x_host seed (bf16)
                pl.BlockSpec(memory_space=pl.ANY),       # x_flow seed (bf16)
                pl.BlockSpec(memory_space=pl.ANY),       # a_sends  [nf, nh]
                pl.BlockSpec(memory_space=pl.ANY),       # a_prec   [nf, nf]
                pl.BlockSpec(memory_space=pl.ANY),       # a_rev    [nh, nf]
                pl.BlockSpec(memory_space=pl.ANY),       # a_reach  [nh, nf]
                # per-block packed weights: pipelined (next block prefetched during compute)
                pl.BlockSpec((1, H, 4 * H), lambda b: (b, 0, 0)),
                pl.BlockSpec((1, H, 2 * H), lambda b: (b, 0, 0)),
                pl.BlockSpec((1, 8, H), lambda b: (b, 0, 0)),
            ],
            out_specs=(pl.BlockSpec((nh_pad, H), lambda b: (0, 0)),
                       pl.BlockSpec((nf_pad, H), lambda b: (0, 0))),
            scratch_shapes=[
                pltpu.VMEM((nf_pad, nh_pad), jnp.bfloat16),   # a_sends (0.5-scaled, resident)
                pltpu.VMEM((nf_pad, nf_pad), jnp.bfloat16),   # a_prec
                pltpu.VMEM((nh_pad, nf_pad), jnp.bfloat16),   # a_rev
                pltpu.VMEM((nh_pad, nf_pad), jnp.bfloat16),   # a_reach
                pltpu.SemaphoreType.DMA((6,)),
            ],
        ),
        compiler_params=pltpu.CompilerParams(
            dimension_semantics=("arbitrary",),               # sequential carry across blocks
            vmem_limit_bytes=_vmem_budget_bytes(nh_pad, nf_pad, H),
        ),
    )(prep["x_host_p"], prep["x_flow_p"],
      prep["a_sends"], prep["a_prec"], prep["a_rev"], prep["a_reach"],
      prep["w_flow_stack"], prep["w_host_stack"], prep["gb_stack"])

    return (out_host[:nh_real, :prep["H_real"]].astype(jnp.float32),
            out_flow[:nf_real, :prep["H_real"]].astype(jnp.float32))


# --------------------------------------------------------------------------------------
# Host-side preparation: dense row-normalized adjacencies, padding, weight packing.
# --------------------------------------------------------------------------------------
def _dense_norm_adj(edge_index, n_src, n_dst):
    """A[dst, src] normalized by in-degree (SAGE mean aggregation)."""
    src, dst = edge_index[0], edge_index[1]
    counts = jnp.zeros((n_dst, n_src), jnp.float32).at[dst, src].add(1.0)
    deg = counts.sum(axis=1, keepdims=True)
    return counts / jnp.maximum(deg, 1.0)


def prepare_inputs(x_dict, edge_index_dict, params):
    H_real = x_dict["host"].shape[1]
    H_pad = _round_up(max(H_real, LANE), LANE)
    nh_real, nf_real = x_dict["host"].shape[0], x_dict["flow"].shape[0]
    nh_pad = _round_up(nh_real, ROW_PAD)
    nf_pad = _round_up(nf_real, ROW_PAD)

    def pad2(x, r, c):
        return jnp.pad(x, ((0, r - x.shape[0]), (0, c - x.shape[1])))

    x_host_p = pad2(x_dict["host"].astype(jnp.float32), nh_pad, H_pad).astype(jnp.bfloat16)
    x_flow_p = pad2(x_dict["flow"].astype(jnp.float32), nf_pad, H_pad).astype(jnp.bfloat16)

    # HeteroConv(aggr='mean') over 2 edge types per destination -> fold 0.5 into A;
    # bf16 for the MXU.
    a_sends = (0.5 * _dense_norm_adj(edge_index_dict[("host", "sends", "flow")],
                                     nh_pad, nf_pad)).astype(jnp.bfloat16)
    a_prec = (0.5 * _dense_norm_adj(edge_index_dict[("flow", "precedes", "flow")],
                                    nf_pad, nf_pad)).astype(jnp.bfloat16)
    a_rev = (0.5 * _dense_norm_adj(edge_index_dict[("flow", "rev_sends", "host")],
                                   nf_pad, nh_pad)).astype(jnp.bfloat16)
    a_reach = (0.5 * _dense_norm_adj(edge_index_dict[("flow", "reaches", "host")],
                                     nf_pad, nh_pad)).astype(jnp.bfloat16)

    def pad_w(w):
        return jnp.pad(w, ((0, H_pad - H_real), (0, H_pad - H_real)))

    w_flow_blocks, w_host_blocks, gb_blocks = [], [], []
    for p in params:
        wl_s, _bl_s, wr_s = p["sends"]
        wl_r, _bl_r, wr_r = p["rev_sends"]
        wl_p, _bl_p, wr_p = p["precedes"]
        wl_c, _bl_c, wr_c = p["reaches"]
        gamma, beta = p["bn"]
        # SAGE biases intentionally dropped (exactly cancelled by training-mode BN).
        w_flow_blocks.append(jnp.concatenate(
            [pad_w(wl_p), pad_w(wl_r), pad_w(wl_c), pad_w(0.5 * (wr_s + wr_p))], axis=1))
        w_host_blocks.append(jnp.concatenate(
            [pad_w(wl_s), pad_w(0.5 * (wr_r + wr_c))], axis=1))
        gb = jnp.stack([jnp.pad(gamma, (0, H_pad - H_real)),
                        jnp.pad(beta, (0, H_pad - H_real))], axis=0)
        gb_blocks.append(jnp.pad(gb, ((0, 6), (0, 0))))   # pad rows 2..7 -> [8, H_pad]

    return dict(
        H_real=H_real, H_pad=H_pad,
        nh_real=nh_real, nf_real=nf_real, nh_pad=nh_pad, nf_pad=nf_pad,
        x_host_p=x_host_p, x_flow_p=x_flow_p,
        a_sends=a_sends, a_prec=a_prec, a_rev=a_rev, a_reach=a_reach,
        w_flow_stack=jnp.stack(w_flow_blocks, 0).astype(jnp.bfloat16),
        w_host_stack=jnp.stack(w_host_blocks, 0).astype(jnp.bfloat16),
        gb_stack=jnp.stack(gb_blocks, 0).astype(jnp.float32),
    )


def hetero_graph_feature_extractor(x_dict, edge_index_dict, params):
    prep = prepare_inputs(x_dict, edge_index_dict, params)
    out_host, out_flow = run_hetero_blocks(prep)
    return {"host": out_host, "flow": out_flow}


# --------------------------------------------------------------------------------------
# References.
# --------------------------------------------------------------------------------------
def reference_fused(x_dict, edge_index_dict, params):
    """Pure-JAX model of the exact computation the kernel performs (same bf16 policy)."""
    prep = prepare_inputs(x_dict, edge_index_dict, params)
    H = prep["H_pad"]
    bf16 = jnp.bfloat16
    xh, xf = prep["x_host_p"], prep["x_flow_p"]
    for b in range(prep["w_flow_stack"].shape[0]):
        wf = prep["w_flow_stack"][b]
        wh = prep["w_host_stack"][b]
        gamma = prep["gb_stack"][b, 0:1, :]
        beta = prep["gb_stack"][b, 1:2, :]
        y_f = jnp.dot(xf, wf, preferred_element_type=jnp.float32)
        y_h = jnp.dot(xh, wh, preferred_element_type=jnp.float32)
        flow_pre = (jnp.dot(prep["a_sends"], y_h[:, 0:H].astype(bf16),
                            preferred_element_type=jnp.float32)
                    + jnp.dot(prep["a_prec"], y_f[:, 0:H].astype(bf16),
                              preferred_element_type=jnp.float32)
                    + y_f[:, 3 * H:4 * H])
        host_pre = (jnp.dot(prep["a_rev"], y_f[:, H:2 * H].astype(bf16),
                            preferred_element_type=jnp.float32)
                    + jnp.dot(prep["a_reach"], y_f[:, 2 * H:3 * H].astype(bf16),
                              preferred_element_type=jnp.float32)
                    + y_h[:, H:2 * H])
        xf = _bn_lrelu(flow_pre, prep["nf_real"], gamma, beta).astype(bf16)
        xh = _bn_lrelu(host_pre, prep["nh_real"], gamma, beta).astype(bf16)
    return {"host": xh[:prep["nh_real"], :prep["H_real"]].astype(jnp.float32),
            "flow": xf[:prep["nf_real"], :prep["H_real"]].astype(jnp.float32)}


def reference_exact(x_dict, edge_index_dict, params):
    """Direct f32 translation of the PyTorch module (biases included, no fusion)."""
    nh, nf = x_dict["host"].shape[0], x_dict["flow"].shape[0]
    a_sends = _dense_norm_adj(edge_index_dict[("host", "sends", "flow")], nh, nf)
    a_prec = _dense_norm_adj(edge_index_dict[("flow", "precedes", "flow")], nf, nf)
    a_rev = _dense_norm_adj(edge_index_dict[("flow", "rev_sends", "host")], nf, nh)
    a_reach = _dense_norm_adj(edge_index_dict[("flow", "reaches", "host")], nf, nh)

    def sage(a, x_src, x_dst, wl, bl, wr):
        return jnp.dot(jnp.dot(a, x_src), wl) + bl + jnp.dot(x_dst, wr)

    def bn_lrelu(x, gamma, beta):
        mean = jnp.mean(x, axis=0, keepdims=True)
        var = jnp.mean((x - mean) ** 2, axis=0, keepdims=True)
        y = (x - mean) * lax.rsqrt(var + BN_EPS) * gamma[None, :] + beta[None, :]
        return jnp.where(y >= 0.0, y, NEG_SLOPE * y)

    xh, xf = x_dict["host"], x_dict["flow"]
    for p in params:
        o_sends = sage(a_sends, xh, xf, *p["sends"])
        o_prec = sage(a_prec, xf, xf, *p["precedes"])
        o_rev = sage(a_rev, xf, xh, *p["rev_sends"])
        o_reach = sage(a_reach, xf, xh, *p["reaches"])
        gamma, beta = p["bn"]
        xf_new = bn_lrelu(0.5 * (o_sends + o_prec), gamma, beta)
        xh_new = bn_lrelu(0.5 * (o_rev + o_reach), gamma, beta)
        xh, xf = xh_new, xf_new
    return {"host": xh, "flow": xf}


# --------------------------------------------------------------------------------------
# Synthetic parameters mirroring the module's per-block shapes.
# --------------------------------------------------------------------------------------
def init_params(key, num_blocks, hidden):
    params = []
    for _ in range(num_blocks):
        block = {}
        for et in ("sends", "rev_sends", "precedes", "reaches"):
            key, k1, k2, k3 = jax.random.split(key, 4)
            wl = 0.1 * jax.random.normal(k1, (hidden, hidden), jnp.float32)
            bl = 0.05 * jax.random.normal(k2, (hidden,), jnp.float32)
            wr = 0.1 * jax.random.normal(k3, (hidden, hidden), jnp.float32)
            block[et] = (wl, bl, wr)
        key, kg, kb = jax.random.split(key, 3)
        gamma = 1.0 + 0.1 * jax.random.normal(kg, (hidden,), jnp.float32)
        beta = 0.1 * jax.random.normal(kb, (hidden,), jnp.float32)
        block["bn"] = (gamma, beta)
        params.append(block)
    return params, key


if __name__ == "__main__":
    num_blocks = 2
    hidden = 32
    n_host, n_flow = 16, 24
    n_edges = 48

    key = jax.random.PRNGKey(0)
    key, kh, kf = jax.random.split(key, 3)
    x_dict = {
        "host": jax.random.normal(kh, (n_host, hidden), jnp.float32),
        "flow": jax.random.normal(kf, (n_flow, hidden), jnp.float32),
    }

    def rand_edges(k, n_src, n_dst):
        k1, k2 = jax.random.split(k)
        src = jax.random.randint(k1, (n_edges,), 0, n_src, jnp.int32)
        dst = jax.random.randint(k2, (n_edges,), 0, n_dst, jnp.int32)
        return jnp.stack([src, dst], axis=0)

    key, k1, k2, k3, k4 = jax.random.split(key, 5)
    edge_index_dict = {
        ("host", "sends", "flow"): rand_edges(k1, n_host, n_flow),
        ("flow", "rev_sends", "host"): rand_edges(k2, n_flow, n_host),
        ("flow", "precedes", "flow"): rand_edges(k3, n_flow, n_flow),
        ("flow", "reaches", "host"): rand_edges(k4, n_flow, n_host),
    }

    params, key = init_params(key, num_blocks, hidden)

    out = hetero_graph_feature_extractor(x_dict, edge_index_dict, params)
    out = jax.block_until_ready(out)

    ref_fused = reference_fused(x_dict, edge_index_dict, params)
    ref_exact = reference_exact(x_dict, edge_index_dict, params)
    for k in ("host", "flow"):
        assert out[k].shape == (x_dict[k].shape[0], hidden)
        assert bool(jnp.all(jnp.isfinite(out[k])))
        # Kernel vs a pure-JAX model of the same bf16-input / f32-accumulate computation.
        assert bool(jnp.allclose(out[k], ref_fused[k], rtol=1e-2, atol=1e-2)), k
        # Sanity vs the direct f32 module translation (bias included there; the only
        # deviation is the deliberate bf16 cast of adjacencies / weights / carry).
        assert bool(jnp.allclose(out[k], ref_exact[k], rtol=1e-1, atol=1e-1)), k

    print("KERNEL_OK")
</pallas_src>

<mosaic_0001>
module attributes {stable_mosaic.version = 11 : i64} {
  func.func @kernel(%arg0: i32, %arg1: memref<128x128xbf16, #tpu.memory_space<any>>, %arg2: memref<128x128xbf16, #tpu.memory_space<any>>, %arg3: memref<128x128xbf16, #tpu.memory_space<any>>, %arg4: memref<128x128xbf16, #tpu.memory_space<any>>, %arg5: memref<128x128xbf16, #tpu.memory_space<any>>, %arg6: memref<128x128xbf16, #tpu.memory_space<any>>, %arg7: memref<1x128x512xbf16, #tpu.memory_space<vmem>>, %arg8: memref<1x128x256xbf16, #tpu.memory_space<vmem>>, %arg9: memref<1x8x128xf32, #tpu.memory_space<vmem>>, %arg10: memref<128x128xbf16, #tpu.memory_space<vmem>>, %arg11: memref<128x128xbf16, #tpu.memory_space<vmem>>, %arg12: memref<128x128xbf16, #tpu.memory_space<vmem>>, %arg13: memref<128x128xbf16, #tpu.memory_space<vmem>>, %arg14: memref<128x128xbf16, #tpu.memory_space<vmem>>, %arg15: memref<128x128xbf16, #tpu.memory_space<vmem>>, %arg16: memref<6x!tpu.dma_semaphore, #tpu.memory_space<semaphore_mem>>) attributes {dimension_semantics = [#tpu.dimension_semantics<arbitrary>], iteration_bounds = array<i64: 2>, scalar_prefetch = 0 : i64, scratch_operands = 5 : i64, tpu.core_type = #tpu.core_type<tc>, window_params = [{}, {}, {}, {}, {}, {}, {transform_indices = @transform_6, window_bounds = array<i64: 1, 128, 512>}, {transform_indices = @transform_7, window_bounds = array<i64: 1, 128, 256>}, {transform_indices = @transform_8, window_bounds = array<i64: 1, 8, 128>}, {pipeline_mode = #tpu.pipeline_mode<synchronous>, transform_indices = @transform_9, window_bounds = array<i64: 128, 128>}, {pipeline_mode = #tpu.pipeline_mode<synchronous>, transform_indices = @transform_10, window_bounds = array<i64: 128, 128>}]} {
    %c0_i32 = arith.constant 0 : i32
    %0 = arith.cmpi eq, %arg0, %c0_i32 : i32
    %1 = arith.extui %0 : i1 to i32
    %c0_i32_0 = arith.constant 0 : i32
    %2 = arith.cmpi ne, %1, %c0_i32_0 : i32
    scf.if %2 {
      %c0_i32_48 = arith.constant 0 : i32
      %113 = tpu.memref_slice %arg16[%c0_i32_48] : memref<6x!tpu.dma_semaphore, #tpu.memory_space<semaphore_mem>> -> memref<1x!tpu.dma_semaphore, #tpu.memory_space<semaphore_mem>>
      %114 = tpu.memref_squeeze %113 : memref<1x!tpu.dma_semaphore, #tpu.memory_space<semaphore_mem>> -> memref<!tpu.dma_semaphore, #tpu.memory_space<semaphore_mem>>
      tpu.enqueue_dma source(%arg3 : memref<128x128xbf16, #tpu.memory_space<any>>) target(%arg12 : memref<128x128xbf16, #tpu.memory_space<vmem>>) target_semaphore(%114 : memref<!tpu.dma_semaphore, #tpu.memory_space<semaphore_mem>>)
      %c1_i32 = arith.constant 1 : i32
      %115 = tpu.memref_slice %arg16[%c1_i32] : memref<6x!tpu.dma_semaphore, #tpu.memory_space<semaphore_mem>> -> memref<1x!tpu.dma_semaphore, #tpu.memory_space<semaphore_mem>>
      %116 = tpu.memref_squeeze %115 : memref<1x!tpu.dma_semaphore, #tpu.memory_space<semaphore_mem>> -> memref<!tpu.dma_semaphore, #tpu.memory_space<semaphore_mem>>
      tpu.enqueue_dma source(%arg4 : memref<128x128xbf16, #tpu.memory_space<any>>) target(%arg13 : memref<128x128xbf16, #tpu.memory_space<vmem>>) target_semaphore(%116 : memref<!tpu.dma_semaphore, #tpu.memory_space<semaphore_mem>>)
      %c2_i32 = arith.constant 2 : i32
      %117 = tpu.memref_slice %arg16[%c2_i32] : memref<6x!tpu.dma_semaphore, #tpu.memory_space<semaphore_mem>> -> memref<1x!tpu.dma_semaphore, #tpu.memory_space<semaphore_mem>>
      %118 = tpu.memref_squeeze %117 : memref<1x!tpu.dma_semaphore, #tpu.memory_space<semaphore_mem>> -> memref<!tpu.dma_semaphore, #tpu.memory_space<semaphore_mem>>
      tpu.enqueue_dma source(%arg5 : memref<128x128xbf16, #tpu.memory_space<any>>) target(%arg14 : memref<128x128xbf16, #tpu.memory_space<vmem>>) target_semaphore(%118 : memref<!tpu.dma_semaphore, #tpu.memory_space<semaphore_mem>>)
      %c3_i32 = arith.constant 3 : i32
      %119 = tpu.memref_slice %arg16[%c3_i32] : memref<6x!tpu.dma_semaphore, #tpu.memory_space<semaphore_mem>> -> memref<1x!tpu.dma_semaphore, #tpu.memory_space<semaphore_mem>>
      %120 = tpu.memref_squeeze %119 : memref<1x!tpu.dma_semaphore, #tpu.memory_space<semaphore_mem>> -> memref<!tpu.dma_semaphore, #tpu.memory_space<semaphore_mem>>
      tpu.enqueue_dma source(%arg6 : memref<128x128xbf16, #tpu.memory_space<any>>) target(%arg15 : memref<128x128xbf16, #tpu.memory_space<vmem>>) target_semaphore(%120 : memref<!tpu.dma_semaphore, #tpu.memory_space<semaphore_mem>>)
      %c4_i32 = arith.constant 4 : i32
      %121 = tpu.memref_slice %arg16[%c4_i32] : memref<6x!tpu.dma_semaphore, #tpu.memory_space<semaphore_mem>> -> memref<1x!tpu.dma_semaphore, #tpu.memory_space<semaphore_mem>>
      %122 = tpu.memref_squeeze %121 : memref<1x!tpu.dma_semaphore, #tpu.memory_space<semaphore_mem>> -> memref<!tpu.dma_semaphore, #tpu.memory_space<semaphore_mem>>
      tpu.enqueue_dma source(%arg1 : memref<128x128xbf16, #tpu.memory_space<any>>) target(%arg10 : memref<128x128xbf16, #tpu.memory_space<vmem>>) target_semaphore(%122 : memref<!tpu.dma_semaphore, #tpu.memory_space<semaphore_mem>>)
      %c5_i32 = arith.constant 5 : i32
      %123 = tpu.memref_slice %arg16[%c5_i32] : memref<6x!tpu.dma_semaphore, #tpu.memory_space<semaphore_mem>> -> memref<1x!tpu.dma_semaphore, #tpu.memory_space<semaphore_mem>>
      %124 = tpu.memref_squeeze %123 : memref<1x!tpu.dma_semaphore, #tpu.memory_space<semaphore_mem>> -> memref<!tpu.dma_semaphore, #tpu.memory_space<semaphore_mem>>
      tpu.enqueue_dma source(%arg2 : memref<128x128xbf16, #tpu.memory_space<any>>) target(%arg11 : memref<128x128xbf16, #tpu.memory_space<vmem>>) target_semaphore(%124 : memref<!tpu.dma_semaphore, #tpu.memory_space<semaphore_mem>>)
      %c0_i32_49 = arith.constant 0 : i32
      %125 = tpu.memref_slice %arg16[%c0_i32_49] : memref<6x!tpu.dma_semaphore, #tpu.memory_space<semaphore_mem>> -> memref<1x!tpu.dma_semaphore, #tpu.memory_space<semaphore_mem>>
      %126 = tpu.memref_squeeze %125 : memref<1x!tpu.dma_semaphore, #tpu.memory_space<semaphore_mem>> -> memref<!tpu.dma_semaphore, #tpu.memory_space<semaphore_mem>>
      tpu.wait_dma2 semaphore(%126 : memref<!tpu.dma_semaphore, #tpu.memory_space<semaphore_mem>>) src(%arg3 : memref<128x128xbf16, #tpu.memory_space<any>>) dst(%arg12 : memref<128x128xbf16, #tpu.memory_space<vmem>>)
      %c1_i32_50 = arith.constant 1 : i32
      %127 = tpu.memref_slice %arg16[%c1_i32_50] : memref<6x!tpu.dma_semaphore, #tpu.memory_space<semaphore_mem>> -> memref<1x!tpu.dma_semaphore, #tpu.memory_space<semaphore_mem>>
      %128 = tpu.memref_squeeze %127 : memref<1x!tpu.dma_semaphore, #tpu.memory_space<semaphore_mem>> -> memref<!tpu.dma_semaphore, #tpu.memory_space<semaphore_mem>>
      tpu.wait_dma2 semaphore(%128 : memref<!tpu.dma_semaphore, #tpu.memory_space<semaphore_mem>>) src(%arg4 : memref<128x128xbf16, #tpu.memory_space<any>>) dst(%arg13 : memref<128x128xbf16, #tpu.memory_space<vmem>>)
      %c2_i32_51 = arith.constant 2 : i32
      %129 = tpu.memref_slice %arg16[%c2_i32_51] : memref<6x!tpu.dma_semaphore, #tpu.memory_space<semaphore_mem>> -> memref<1x!tpu.dma_semaphore, #tpu.memory_space<semaphore_mem>>
      %130 = tpu.memref_squeeze %129 : memref<1x!tpu.dma_semaphore, #tpu.memory_space<semaphore_mem>> -> memref<!tpu.dma_semaphore, #tpu.memory_space<semaphore_mem>>
      tpu.wait_dma2 semaphore(%130 : memref<!tpu.dma_semaphore, #tpu.memory_space<semaphore_mem>>) src(%arg5 : memref<128x128xbf16, #tpu.memory_space<any>>) dst(%arg14 : memref<128x128xbf16, #tpu.memory_space<vmem>>)
      %c3_i32_52 = arith.constant 3 : i32
      %131 = tpu.memref_slice %arg16[%c3_i32_52] : memref<6x!tpu.dma_semaphore, #tpu.memory_space<semaphore_mem>> -> memref<1x!tpu.dma_semaphore, #tpu.memory_space<semaphore_mem>>
      %132 = tpu.memref_squeeze %131 : memref<1x!tpu.dma_semaphore, #tpu.memory_space<semaphore_mem>> -> memref<!tpu.dma_semaphore, #tpu.memory_space<semaphore_mem>>
      tpu.wait_dma2 semaphore(%132 : memref<!tpu.dma_semaphore, #tpu.memory_space<semaphore_mem>>) src(%arg6 : memref<128x128xbf16, #tpu.memory_space<any>>) dst(%arg15 : memref<128x128xbf16, #tpu.memory_space<vmem>>)
      %c4_i32_53 = arith.constant 4 : i32
      %133 = tpu.memref_slice %arg16[%c4_i32_53] : memref<6x!tpu.dma_semaphore, #tpu.memory_space<semaphore_mem>> -> memref<1x!tpu.dma_semaphore, #tpu.memory_space<semaphore_mem>>
      %134 = tpu.memref_squeeze %133 : memref<1x!tpu.dma_semaphore, #tpu.memory_space<semaphore_mem>> -> memref<!tpu.dma_semaphore, #tpu.memory_space<semaphore_mem>>
      tpu.wait_dma2 semaphore(%134 : memref<!tpu.dma_semaphore, #tpu.memory_space<semaphore_mem>>) src(%arg1 : memref<128x128xbf16, #tpu.memory_space<any>>) dst(%arg10 : memref<128x128xbf16, #tpu.memory_space<vmem>>)
      %c5_i32_54 = arith.constant 5 : i32
      %135 = tpu.memref_slice %arg16[%c5_i32_54] : memref<6x!tpu.dma_semaphore, #tpu.memory_space<semaphore_mem>> -> memref<1x!tpu.dma_semaphore, #tpu.memory_space<semaphore_mem>>
      %136 = tpu.memref_squeeze %135 : memref<1x!tpu.dma_semaphore, #tpu.memory_space<semaphore_mem>> -> memref<!tpu.dma_semaphore, #tpu.memory_space<semaphore_mem>>
      tpu.wait_dma2 semaphore(%136 : memref<!tpu.dma_semaphore, #tpu.memory_space<semaphore_mem>>) src(%arg2 : memref<128x128xbf16, #tpu.memory_space<any>>) dst(%arg11 : memref<128x128xbf16, #tpu.memory_space<vmem>>)
    } else {
    }
    %c0 = arith.constant 0 : index
    %c0_1 = arith.constant 0 : index
    %3 = vector.load %arg10[%c0, %c0_1] : memref<128x128xbf16, #tpu.memory_space<vmem>>, vector<128x128xbf16>
    %c0_2 = arith.constant 0 : index
    %c0_3 = arith.constant 0 : index
    %4 = vector.load %arg11[%c0_2, %c0_3] : memref<128x128xbf16, #tpu.memory_space<vmem>>, vector<128x128xbf16>
    %c0_4 = arith.constant 0 : index
    %c0_5 = arith.constant 0 : index
    %c0_6 = arith.constant 0 : index
    %5 = vector.load %arg7[%c0_4, %c0_5, %c0_6] : memref<1x128x512xbf16, #tpu.memory_space<vmem>>, vector<1x128x512xbf16>
    %6 = vector.shape_cast %5 : vector<1x128x512xbf16> to vector<128x512xbf16>
    %c0_7 = arith.constant 0 : index
    %c0_8 = arith.constant 0 : index
    %c0_9 = arith.constant 0 : index
    %7 = vector.load %arg8[%c0_7, %c0_8, %c0_9] : memref<1x128x256xbf16, #tpu.memory_space<vmem>>, vector<1x128x256xbf16>
    %8 = vector.shape_cast %7 : vector<1x128x256xbf16> to vector<128x256xbf16>
    %c0_10 = arith.constant 0 : index
    %c0_11 = arith.constant 0 : index
    %c0_12 = arith.constant 0 : index
    %9 = vector.load %arg9[%c0_10, %c0_11, %c0_12] : memref<1x8x128xf32, #tpu.memory_space<vmem>>, vector<1x8x128xf32>
    %10 = vector.shape_cast %9 : vector<1x8x128xf32> to vector<8x128xf32>
    %11 = vector.extract_strided_slice %10 {offsets = [0, 0], sizes = [1, 128], strides = [1, 1]} : vector<8x128xf32> to vector<1x128xf32>
    %12 = vector.extract_strided_slice %10 {offsets = [1, 0], sizes = [1, 128], strides = [1, 1]} : vector<8x128xf32> to vector<1x128xf32>
    %cst = arith.constant dense<0.000000e+00> : vector<128x512xf32>
    %13 = tpu.matmul %4, %6, %cst {dimension_numbers = #tpu.dot_dimension_numbers<[1], [0], [0], [1], [0, 0, 1, 1], [], []>} : vector<128x128xbf16>, vector<128x512xbf16>, vector<128x512xf32> -> vector<128x512xf32>
    %cst_13 = arith.constant dense<0.000000e+00> : vector<128x256xf32>
    %14 = tpu.matmul %3, %8, %cst_13 {dimension_numbers = #tpu.dot_dimension_numbers<[1], [0], [0], [1], [0, 0, 1, 1], [], []>} : vector<128x128xbf16>, vector<128x256xbf16>, vector<128x256xf32> -> vector<128x256xf32>
    %c0_14 = arith.constant 0 : index
    %c0_15 = arith.constant 0 : index
    %15 = vector.load %arg12[%c0_14, %c0_15] : memref<128x128xbf16, #tpu.memory_space<vmem>>, vector<128x128xbf16>
    %16 = vector.extract_strided_slice %14 {offsets = [0, 0], sizes = [128, 128], strides = [1, 1]} : vector<128x256xf32> to vector<128x128xf32>
    %17 = arith.truncf %16 : vector<128x128xf32> to vector<128x128xbf16>
    %cst_16 = arith.constant dense<0.000000e+00> : vector<128x128xf32>
    %18 = tpu.matmul %15, %17, %cst_16 {dimension_numbers = #tpu.dot_dimension_numbers<[1], [0], [0], [1], [0, 0, 1, 1], [], []>} : vector<128x128xbf16>, vector<128x128xbf16>, vector<128x128xf32> -> vector<128x128xf32>
    %c0_17 = arith.constant 0 : index
    %c0_18 = arith.constant 0 : index
    %19 = vector.load %arg13[%c0_17, %c0_18] : memref<128x128xbf16, #tpu.memory_space<vmem>>, vector<128x128xbf16>
    %20 = vector.extract_strided_slice %13 {offsets = [0, 0], sizes = [128, 128], strides = [1, 1]} : vector<128x512xf32> to vector<128x128xf32>
    %21 = arith.truncf %20 : vector<128x128xf32> to vector<128x128xbf16>
    %cst_19 = arith.constant dense<0.000000e+00> : vector<128x128xf32>
    %22 = tpu.matmul %19, %21, %cst_19 {dimension_numbers = #tpu.dot_dimension_numbers<[1], [0], [0], [1], [0, 0, 1, 1], [], []>} : vector<128x128xbf16>, vector<128x128xbf16>, vector<128x128xf32> -> vector<128x128xf32>
    %23 = arith.addf %18, %22 : vector<128x128xf32>
    %24 = vector.extract_strided_slice %13 {offsets = [0, 384], sizes = [128, 128], strides = [1, 1]} : vector<128x512xf32> to vector<128x128xf32>
    %25 = arith.addf %23, %24 : vector<128x128xf32>
    %c0_20 = arith.constant 0 : index
    %c0_21 = arith.constant 0 : index
    %26 = vector.load %arg14[%c0_20, %c0_21] : memref<128x128xbf16, #tpu.memory_space<vmem>>, vector<128x128xbf16>
    %27 = vector.extract_strided_slice %13 {offsets = [0, 128], sizes = [128, 128], strides = [1, 1]} : vector<128x512xf32> to vector<128x128xf32>
    %28 = arith.truncf %27 : vector<128x128xf32> to vector<128x128xbf16>
    %cst_22 = arith.constant dense<0.000000e+00> : vector<128x128xf32>
    %29 = tpu.matmul %26, %28, %cst_22 {dimension_numbers = #tpu.dot_dimension_numbers<[1], [0], [0], [1], [0, 0, 1, 1], [], []>} : vector<128x128xbf16>, vector<128x128xbf16>, vector<128x128xf32> -> vector<128x128xf32>
    %c0_23 = arith.constant 0 : index
    %c0_24 = arith.constant 0 : index
    %30 = vector.load %arg15[%c0_23, %c0_24] : memref<128x128xbf16, #tpu.memory_space<vmem>>, vector<128x128xbf16>
    %31 = vector.extract_strided_slice %13 {offsets = [0, 256], sizes = [128, 128], strides = [1, 1]} : vector<128x512xf32> to vector<128x128xf32>
    %32 = arith.truncf %31 : vector<128x128xf32> to vector<128x128xbf16>
    %cst_25 = arith.constant dense<0.000000e+00> : vector<128x128xf32>
    %33 = tpu.matmul %30, %32, %cst_25 {dimension_numbers = #tpu.dot_dimension_numbers<[1], [0], [0], [1], [0, 0, 1, 1], [], []>} : vector<128x128xbf16>, vector<128x128xbf16>, vector<128x128xf32> -> vector<128x128xf32>
    %34 = arith.addf %29, %33 : vector<128x128xf32>
    %35 = vector.extract_strided_slice %14 {offsets = [0, 128], sizes = [128, 128], strides = [1, 1]} : vector<128x256xf32> to vector<128x128xf32>
    %36 = arith.addf %34, %35 : vector<128x128xf32>
    %cst_26 = arith.constant dense<0.000000e+00> : vector<128xf32>
    %37 = vector.multi_reduction <add>, %25, %cst_26 [0] : vector<128x128xf32> to vector<128xf32>
    %38 = vector.shape_cast %37 : vector<128xf32> to vector<1x128xf32>
    %cst_27 = arith.constant 0.0416666679 : f32
    %39 = vector.broadcast %cst_27 : f32 to vector<1x128xf32>
    %40 = arith.mulf %38, %39 : vector<1x128xf32>
    %41 = arith.mulf %25, %25 : vector<128x128xf32>
    %cst_28 = arith.constant dense<0.000000e+00> : vector<128xf32>
    %42 = vector.multi_reduction <add>, %41, %cst_28 [0] : vector<128x128xf32> to vector<128xf32>
    %43 = vector.shape_cast %42 : vector<128xf32> to vector<1x128xf32>
    %cst_29 = arith.constant 0.0416666679 : f32
    %44 = vector.broadcast %cst_29 : f32 to vector<1x128xf32>
    %45 = arith.mulf %43, %44 : vector<1x128xf32>
    %46 = arith.mulf %40, %40 : vector<1x128xf32>
    %47 = arith.subf %45, %46 : vector<1x128xf32>
    %cst_30 = arith.constant 0.000000e+00 : f32
    %48 = vector.broadcast %cst_30 : f32 to vector<1x128xf32>
    %49 = arith.maximumf %47, %48 : vector<1x128xf32>
    %50 = vector.broadcast %40 : vector<1x128xf32> to vector<128x128xf32>
    %51 = arith.subf %25, %50 : vector<128x128xf32>
    %cst_31 = arith.constant 9.99999974E-6 : f32
    %52 = vector.broadcast %cst_31 : f32 to vector<1x128xf32>
    %53 = arith.addf %49, %52 : vector<1x128xf32>
    %54 = math.rsqrt %53 : vector<1x128xf32>
    %55 = vector.broadcast %54 : vector<1x128xf32> to vector<128x128xf32>
    %56 = arith.mulf %51, %55 : vector<128x128xf32>
    %57 = vector.broadcast %11 : vector<1x128xf32> to vector<128x128xf32>
    %58 = arith.mulf %56, %57 : vector<128x128xf32>
    %59 = vector.broadcast %12 : vector<1x128xf32> to vector<128x128xf32>
    %60 = arith.addf %58, %59 : vector<128x128xf32>
    %cst_32 = arith.constant 0.000000e+00 : f32
    %61 = vector.broadcast %cst_32 : f32 to vector<128x128xf32>
    %62 = arith.cmpf oge, %60, %61 : vector<128x128xf32>
    %cst_33 = arith.constant 0.00999999977 : f32
    %63 = vector.broadcast %cst_33 : f32 to vector<128x128xf32>
    %64 = arith.mulf %63, %60 : vector<128x128xf32>
    %65 = arith.select %62, %60, %64 : vector<128x128xi1>, vector<128x128xf32>
    %66 = tpu.iota {dimensions = array<i32: 0>} : vector<128x1xi32>
    %c24_i32 = arith.constant 24 : i32
    %67 = vector.broadcast %c24_i32 : i32 to vector<128x1xi32>
    %68 = arith.cmpi slt, %66, %67 : vector<128x1xi32>
    %cst_34 = arith.constant 0.000000e+00 : f32
    %69 = vector.shape_cast %68 : vector<128x1xi1> to vector<128x1xi1>
    %70 = vector.broadcast %69 : vector<128x1xi1> to vector<128x128xi1>
    %71 = vector.broadcast %cst_34 : f32 to vector<128x128xf32>
    %72 = arith.select %70, %65, %71 : vector<128x128xi1>, vector<128x128xf32>
    %73 = arith.truncf %72 : vector<128x128xf32> to vector<128x128xbf16>
    %c0_35 = arith.constant 0 : index
    %c0_36 = arith.constant 0 : index
    %74 = vector.load %arg11[%c0_35, %c0_36] : memref<128x128xbf16, #tpu.memory_space<vmem>>, vector<128x128xbf16>
    tpu.vector_store %arg11[%c0_35, %c0_36], %73 {strides = array<i32>} : memref<128x128xbf16, #tpu.memory_space<vmem>>, vector<128x128xbf16>,
    %cst_37 = arith.constant dense<0.000000e+00> : vector<128xf32>
    %75 = vector.multi_reduction <add>, %36, %cst_37 [0] : vector<128x128xf32> to vector<128xf32>
    %76 = vector.shape_cast %75 : vector<128xf32> to vector<1x128xf32>
    %cst_38 = arith.constant 6.250000e-02 : f32
    %77 = vector.broadcast %cst_38 : f32 to vector<1x128xf32>
    %78 = arith.mulf %76, %77 : vector<1x128xf32>
    %79 = arith.mulf %36, %36 : vector<128x128xf32>
    %cst_39 = arith.constant dense<0.000000e+00> : vector<128xf32>
    %80 = vector.multi_reduction <add>, %79, %cst_39 [0] : vector<128x128xf32> to vector<128xf32>
    %81 = vector.shape_cast %80 : vector<128xf32> to vector<1x128xf32>
    %cst_40 = arith.constant 6.250000e-02 : f32
    %82 = vector.broadcast %cst_40 : f32 to vector<1x128xf32>
    %83 = arith.mulf %81, %82 : vector<1x128xf32>
    %84 = arith.mulf %78, %78 : vector<1x128xf32>
    %85 = arith.subf %83, %84 : vector<1x128xf32>
    %cst_41 = arith.constant 0.000000e+00 : f32
    %86 = vector.broadcast %cst_41 : f32 to vector<1x128xf32>
    %87 = arith.maximumf %85, %86 : vector<1x128xf32>
    %88 = vector.broadcast %78 : vector<1x128xf32> to vector<128x128xf32>
    %89 = arith.subf %36, %88 : vector<128x128xf32>
    %cst_42 = arith.constant 9.99999974E-6 : f32
    %90 = vector.broadcast %cst_42 : f32 to vector<1x128xf32>
    %91 = arith.addf %87, %90 : vector<1x128xf32>
    %92 = math.rsqrt %91 : vector<1x128xf32>
    %93 = vector.broadcast %92 : vector<1x128xf32> to vector<128x128xf32>
    %94 = arith.mulf %89, %93 : vector<128x128xf32>
    %95 = vector.broadcast %11 : vector<1x128xf32> to vector<128x128xf32>
    %96 = arith.mulf %94, %95 : vector<128x128xf32>
    %97 = vector.broadcast %12 : vector<1x128xf32> to vector<128x128xf32>
    %98 = arith.addf %96, %97 : vector<128x128xf32>
    %cst_43 = arith.constant 0.000000e+00 : f32
    %99 = vector.broadcast %cst_43 : f32 to vector<128x128xf32>
    %100 = arith.cmpf oge, %98, %99 : vector<128x128xf32>
    %cst_44 = arith.constant 0.00999999977 : f32
    %101 = vector.broadcast %cst_44 : f32 to vector<128x128xf32>
    %102 = arith.mulf %101, %98 : vector<128x128xf32>
    %103 = arith.select %100, %98, %102 : vector<128x128xi1>, vector<128x128xf32>
    %104 = tpu.iota {dimensions = array<i32: 0>} : vector<128x1xi32>
    %c16_i32 = arith.constant 16 : i32
    %105 = vector.broadcast %c16_i32 : i32 to vector<128x1xi32>
    %106 = arith.cmpi slt, %104, %105 : vector<128x1xi32>
    %cst_45 = arith.constant 0.000000e+00 : f32
    %107 = vector.shape_cast %106 : vector<128x1xi1> to vector<128x1xi1>
    %108 = vector.broadcast %107 : vector<128x1xi1> to vector<128x128xi1>
    %109 = vector.broadcast %cst_45 : f32 to vector<128x128xf32>
    %110 = arith.select %108, %103, %109 : vector<128x128xi1>, vector<128x128xf32>
    %111 = arith.truncf %110 : vector<128x128xf32> to vector<128x128xbf16>
    %c0_46 = arith.constant 0 : index
    %c0_47 = arith.constant 0 : index
    %112 = vector.load %arg10[%c0_46, %c0_47] : memref<128x128xbf16, #tpu.memory_space<vmem>>, vector<128x128xbf16>
    tpu.vector_store %arg10[%c0_46, %c0_47], %111 {strides = array<i32>} : memref<128x128xbf16, #tpu.memory_space<vmem>>, vector<128x128xbf16>,
    return
  }
  func.func @transform_6(%arg0: i32) -> (i32, i32, i32) {
    %c0_i32 = arith.constant 0 : i32
    %c0_i32_0 = arith.constant 0 : i32
    %c0_i32_1 = arith.constant 0 : i32
    return %arg0, %c0_i32, %c0_i32_0 : i32, i32, i32
  }
  func.func @transform_7(%arg0: i32) -> (i32, i32, i32) {
    %c0_i32 = arith.constant 0 : i32
    %c0_i32_0 = arith.constant 0 : i32
    %c0_i32_1 = arith.constant 0 : i32
    return %arg0, %c0_i32, %c0_i32_0 : i32, i32, i32
  }
  func.func @transform_8(%arg0: i32) -> (i32, i32, i32) {
    %c0_i32 = arith.constant 0 : i32
    %c0_i32_0 = arith.constant 0 : i32
    %c0_i32_1 = arith.constant 0 : i32
    return %arg0, %c0_i32, %c0_i32_0 : i32, i32, i32
  }
  func.func @transform_9(%arg0: i32) -> (i32, i32) {
    %c0_i32 = arith.constant 0 : i32
    %c0_i32_0 = arith.constant 0 : i32
    %c0_i32_1 = arith.constant 0 : i32
    return %c0_i32, %c0_i32_0 : i32, i32
  }
  func.func @transform_10(%arg0: i32) -> (i32, i32) {
    %c0_i32 = arith.constant 0 : i32
    %c0_i32_0 = arith.constant 0 : i32
    %c0_i32_1 = arith.constant 0 : i32
    return %c0_i32, %c0_i32_0 : i32, i32
  }
}

</mosaic_0001>

<bundles_post_ra>
// kernel: tpu_custom_call.1
= control target key start
LH: loop header
LB: loop body
LE: loop exit
PB: predicated region body
PF: predicated region fallthrough
CT: control target
= control target key end

     0   :  { %s4181_s0 = inlined_call_operand.hbm [shape: bf16[128,128], index: 0, kind: input, shape index: {}]   ;;  %s4182_s1 = inlined_call_operand.hbm [shape: bf16[128,128], index: 1, kind: input, shape index: {}]   ;;  %s4183_s2 = inlined_call_operand.hbm [shape: bf16[128,128], index: 2, kind: input, shape index: {}]   ;;  %s4184_s3 = inlined_call_operand.hbm [shape: bf16[128,128], index: 3, kind: input, shape index: {}]   ;;  %s4185_s4 = inlined_call_operand.hbm [shape: bf16[128,128], index: 4, kind: input, shape index: {}]   ;;  %s4186_s5 = inlined_call_operand.hbm [shape: bf16[128,128], index: 5, kind: input, shape index: {}]   ;;  %s4187_s6 = inlined_call_operand.hbm [shape: bf16[2,128,512], index: 6, kind: input, shape index: {}]   ;;  %s4188_s7 = inlined_call_operand.hbm [shape: bf16[2,128,256], index: 7, kind: input, shape index: {}]   ;;  %s4189_s8 = inlined_call_operand.hbm [shape: f32[2,8,128], index: 8, kind: input, shape index: {}]   ;;  %s4190_s9 = inlined_call_operand.hbm [shape: bf16[128,128], index: 9, kind: output, shape index: {0}]   ;;  %s4191_s10 = inlined_call_operand.hbm [shape: bf16[128,128], index: 10, kind: output, shape index: {1}]  }
   0x1   :  { %4201 = sst [smem:[#allocation56_spill]] %s4188_s7 }
   0x2   :  { %4202 = sst [smem:[#allocation57_spill]] %s4190_s9 }
   0x3   :  { %4203 = sst [smem:[#allocation58_spill]] %s4191_s10 }
   0x4   :  { %16 = vsyncpa [#allocation8], 0 }
   0x5   :  { %18 = vsyncpa [#allocation8 + $0x1], 0 }
   0x6   :  { %19 = vsyncpa [#allocation11], 0 }
   0x7   :  { %21 = vsyncpa [#allocation11 + $0x1], 0 }
   0x8   :  { %22 = vsyncpa [#allocation9], 0 }
   0x9   :  { %23 = vsyncpa [#allocation15], 0  ;;  %s3537_s13 = smov 0   ;;  %s3539_s14 = smov 0  }
   0xa   :  { %s3541_s15 = smov 0   ;;  %s3543_s16 = smov 0  }
   0xb LB: > { %4204 = sst [smem:[#allocation40_spill]] %s3463_s15  ;;  %s3556_s17 = sadd.s32 4294967295, %s3467_s16   ;;  %s3467_s16 = sphi %s3543_s16, %s4239_s16   ;;  %s3463_s15 = sphi %s3541_s15, %s4241_s15   ;;  %s3459_s14 = sphi %s3539_s14, %s4243_s14   ;;  %s3455_s13 = sphi %s3537_s13, %s4242_s13  }
   0xc   : > { %s3559_s18 = sadd.s32 1, %s3467_s16   ;;  %s36_s20 = sadd.s32 1, %s3463_s15 }
   0xd   : > { %4205 = sst [smem:[#allocation41_spill]] %s3559_s18  ;;  %s33_s19 = ssub.s32 %s3467_s16, %s3559_s18 }
   0xe   : > { %p34_p0 = scmp.eq.s32.totalorder %s33_s19, 0  ;;  %p43_p1 = scmp.ne.s32.totalorder %s3463_s15, %s3459_s14 }
   0xf   : > { %p44_p2 = scmp.eq.s32.totalorder %s3467_s16, 0  ;;  %p49_p3 = scmp.ne.s32.totalorder %s3459_s14, %s3455_s13 }
  0x10   : > { %s3569_s21 = scalar_select %p34_p0, %s3463_s15, %s36_s20  }
  0x11   : > { %p45_p4 = por %p44_p2, %p43_p1  ;;  %p50_p5 = scmp.eq.s32.totalorder %s3556_s17, 0 }
  0x12   : > { %4206 = sst [smem:[#allocation42_spill]] %s3569_s21  ;;  %p3028_p6 = scmp.lt.s32.totalorder %s3467_s16, 2 }
  0x13   : > { %p3575_p7 = por %p50_p5, %p49_p3  ;;  %s3580_s23 = sand.u32 1, %s3463_s15  }
  0x14   : > { %p3582_p8 = pnand %p3028_p6, %p45_p4  ;;  %s189_s25 = sand.u32 1, %s3467_s16  }
  0x15   : > { %s2377_s26 = sshll.u32 %s3580_s23, 7  ;;  %s2784_s27 = sshll.u32 %s3467_s16, 7 }
  0x16   : > { %s193_s28 = scalar_lea.vmem [#allocation10], %s2377_s26  ;;  %s4209_s7 = sld [smem:[#allocation56_spill]] }
  0x17   : > { %s201_s29 = sshll.u32 %s193_s28, 4  ;;  %s3592_s19 = scalar_lea.sflag [#allocation11], %s189_s25  ;;  %s202_s29 = int_to_ptr.vmem [resolvable:$true] %s201_s29 }
  0x18   : > { %p3087_p10 = pneg %p3582_p8 }
  0x1c   : > { %s198_s12 = scalar_lea.hbm %s4209_s7, %s2784_s27  ;;  %s3090_s30 = scalar_lea.hbm %s4209_s7, 256 }
  0x1d   : > { %s199_s13 = sshll.u32 %s198_s12, 4  ;;  %s200_s13 = int_to_ptr.hbm [resolvable:$true] %s199_s13 }
  0x1e   : > { %s3083_s20 = sshra.s32 %s200_s13, 4  ;;  %s3084_s20 = int_to_ptr.hbm [resolvable:$true] %s3083_s20 }
  0x1f   : > { %s3085_s21 = scalar_lea.hbm %s3084_s20, 128  ;;  %p3091_p13 = scmp.lt.s32.totalorder %s3084_s20, %s4209_s7 }
  0x20   : > { %p3086_p9 = scmp.ne.s32.totalorder %s3084_s20, %s3085_s21  ;;  %p3092_p0 = scmp.lt.s32.totalorder %s3090_s30, %s3085_s21 }
  0x22   : > { %p3088_p11 = pnand %p3087_p10, %p3086_p9  ;;  %p3093_p1 = por %p3092_p0, %p3091_p13 }
  0x24   : > { %p3089_p12 = pneg %p3088_p11 }
  0x26   : > { %p3094_p2 = pnand %p3093_p1, %p3089_p12 }
  0x28   : > { %3097 = shalt.err (!%p3094_p2)
}
  0x29   : > { %s3469_s25 = smov 128   ;;  %s3470_s12 = smov 8  }
  0x2a   : > { %3024 = dma.hbm_to_vmem [thread:$0]  (!%p3582_p8), %s200_s13, 2048, %s202_s29, %s3592_s19, %s3469_s25, %s3469_s25, %s3470_s12  }
  0x2b   : > { %p2382_p3 = scmp.ge.s32.totalorder %s3467_s16, 1  ;;  %p228_p4 = scmp.lt.s32.totalorder %s3467_s16, 3 }
  0x2c   : > { %s2374_s26 = sshll.u32 %s3580_s23, 8  ;;  %s2783_s20 = sshll.u32 %s3467_s16, 8 }
  0x2d   : > { %p3611_p6 = pnand %p2382_p3, %p228_p4  ;;  %s171_s28 = scalar_lea.vmem [#allocation7], %s2374_s26 }
  0x2e   : > { %s179_s30 = sshll.u32 %s171_s28, 4  ;;  %s176_s7 = scalar_lea.hbm %s4187_s6, %s2783_s20  ;;  %s180_s30 = int_to_ptr.vmem [resolvable:$true] %s179_s30 }
  0x2f   : > { %s177_s15 = sshll.u32 %s176_s7, 4  ;;  %s168_s18 = scalar_lea.sflag [#allocation8], %s3580_s23  ;;  %s178_s15 = int_to_ptr.hbm [resolvable:$true] %s177_s15 }
  0x30   : > { %s3113_s29 = sshra.s32 %s178_s15, 4  ;;  %s3120_s26 = scalar_lea.hbm %s4187_s6, 512  ;;  %s3114_s29 = int_to_ptr.hbm [resolvable:$true] %s3113_s29 }
  0x31   : > { %s3115_s13 = scalar_lea.hbm %s3114_s29, 256  ;;  %p3121_p13 = scmp.lt.s32.totalorder %s3114_s29, %s4187_s6 }
  0x32   : > { %p3116_p9 = scmp.ne.s32.totalorder %s3114_s29, %s3115_s13  ;;  %p3122_p0 = scmp.lt.s32.totalorder %s3120_s26, %s3115_s13 }
  0x34   : > { %p3118_p11 = pnand %p3116_p9, %p3087_p10  ;;  %p3123_p1 = por %p3122_p0, %p3121_p13 }
  0x36   : > { %p3119_p12 = pneg %p3118_p11 }
  0x38   : > { %p3124_p2 = pnand %p3123_p1, %p3119_p12 }
  0x3a   : > { %3127 = shalt.err (!%p3124_p2)
}
  0x3b   : > { %s3471_s7 = smov 256   ;;  %s3472_s20 = smov 16  }
  0x3c   : > { %3021 = dma.hbm_to_vmem [thread:$0]  (!%p3582_p8), %s178_s15, 4096, %s180_s30, %s168_s18, %s3471_s7, %s3471_s7, %s3472_s20  }
  0x3d   : > { %s2380_s27 = sshll.u32 %s3580_s23, 3  ;;  %s2381_s11 = sshll.u32 %s3467_s16, 3 }
  0x3e   : > { %s219_s10 = scalar_lea.hbm %s4189_s8, %s2381_s11  ;;  %s215_s29 = scalar_lea.vmem [#allocation12], %s2380_s27 }
  0x3f   : > { %s221_s9 = sshll.u32 %s219_s10, 4  ;;  %s223_s13 = sshll.u32 %s215_s29, 4  ;;  %s222_s9 = int_to_ptr.hbm [resolvable:$true] %s221_s9  ;;  %s224_s13 = int_to_ptr.vmem [resolvable:$true] %s223_s13 }
  0x40   : > { %s3143_s26 = sshra.s32 %s222_s9, 4  ;;  %s3150_s16 = scalar_lea.hbm %s4189_s8, 16  ;;  %s3144_s26 = int_to_ptr.hbm [resolvable:$true] %s3143_s26 }
  0x41   : > { %s3145_s28 = scalar_lea.hbm %s3144_s26, 8  ;;  %p3151_p11 = scmp.lt.s32.totalorder %s3144_s26, %s4189_s8 }
  0x42   : > { %p3146_p3 = scmp.ne.s32.totalorder %s3144_s26, %s3145_s28  ;;  %p3152_p12 = scmp.lt.s32.totalorder %s3150_s16, %s3145_s28 }
  0x44   : > { %p3148_p4 = pnand %p3146_p3, %p3087_p10  ;;  %p3153_p13 = por %p3152_p12, %p3151_p11 }
  0x46   : > { %p3149_p9 = pneg %p3148_p4 }
  0x48   : > { %p3154_p0 = pnand %p3153_p13, %p3149_p9 }
  0x4a   : > { %3157 = shalt.err (!%p3154_p0)
}
  0x4b   : > { %3027 = dma.hbm_to_vmem [thread:$0]  (!%p3582_p8), %s222_s9, 128, %s224_s13, %s3592_s19  }
  0x4c   : > { %232 = sbr.rel (%p3611_p6) target bundleno = 810 (0x32a), region = 32 }
  0x51   : > { %s3651_s10 = sand.u32 1, %s3459_s14  }
  0x52   : > { %s2383_s7 = sshll.u32 %s3651_s10, 8  ;;  %s235_s20 = scalar_lea.sflag [#allocation8], %s3651_s10 }
  0x53   : > { %s3655_s27 = scalar_lea.vmem [#allocation7], %s2383_s7 }
  0x54   : > { %3414 = dma.done.wait (%p3575_p7), %s235_s20, 4096  }
  0x55   : > { %3416 = vsyncadd (%p3575_p7), %s235_s20, 4294963200  ;;  %s244_s24 = sand.u32 1, %s3556_s17   ;;  %s2384_s19 = sshll.u32 %s3651_s10, 7 }
  0x56   : > { %s245_s21 = scalar_lea.sflag [#allocation11], %s244_s24  ;;  %s3663_s11 = scalar_lea.vmem [#allocation10], %s2384_s19 }
  0x57   : > { %3418 = dma.done.wait (%p3575_p7), %s245_s21, 2176  }
  0x58   : > { %3420 = vsyncadd (%p3575_p7), %s245_s21, 4294965120  ;;  %s2385_s25 = sshll.u32 %s3651_s10, 3  ;;  %s300_s29 = sshll.u32 %s4183_s2, 4  ;;  %s301_s29 = int_to_ptr.hbm [resolvable:$true] %s300_s29 }
  0x59   : > { %s3473_s13 = smov [#allocation2]   ;;  %s314_s18 = sshll.u32 %s4184_s3, 4  ;;  %s315_s18 = int_to_ptr.hbm [resolvable:$true] %s314_s18 }
  0x5a   : > { %s302_s26 = sshll.u32 %s3473_s13, 4  ;;  %s328_s23 = sshll.u32 %s4185_s4, 4  ;;  %s303_s26 = int_to_ptr.vmem [resolvable:$true] %s302_s26  ;;  %s329_s23 = int_to_ptr.hbm [resolvable:$true] %s328_s23 }
  0x5b   : > { %2998 = dma.hbm_to_vmem [thread:$0]  (%p50_p5), %s301_s29, 1024, %s303_s26, [#allocation6] }
  0x5c   : > { %s3474_s30 = smov [#allocation3]   ;;  %s3475_s20 = smov [#allocation4]  }
  0x5d   : > { %s316_s7 = sshll.u32 %s3474_s30, 4  ;;  %s330_s24 = sshll.u32 %s3475_s20, 4  ;;  %s317_s7 = int_to_ptr.vmem [resolvable:$true] %s316_s7  ;;  %s331_s24 = int_to_ptr.vmem [resolvable:$true] %s330_s24 }
  0x5e   : > { %2999 = dma.hbm_to_vmem [thread:$0]  (%p50_p5), %s315_s18, 1024, %s317_s7, [#allocation6 + $0x1] }
  0x5f   : > { %s342_s12 = sshll.u32 %s4186_s5, 4  ;;  %s356_s13 = sshll.u32 %s4181_s0, 4  ;;  %s343_s12 = int_to_ptr.hbm [resolvable:$true] %s342_s12  ;;  %s357_s13 = int_to_ptr.hbm [resolvable:$true] %s356_s13 }
  0x60   : > { %3000 = dma.hbm_to_vmem [thread:$0]  (%p50_p5), %s329_s23, 1024, %s331_s24, [#allocation6 + $0x2] }
  0x61   : > { %s3476_s26 = smov [#allocation5]   ;;  %s3477_s15 = smov [#allocation13]  }
  0x62   : > { %s344_s28 = sshll.u32 %s3476_s26, 4  ;;  %s3693_s18 = sshll.u32 %s3477_s15, 4  ;;  %s345_s28 = int_to_ptr.vmem [resolvable:$true] %s344_s28  ;;  %s359_s18 = int_to_ptr.vmem [resolvable:$true] %s3693_s18 }
  0x63   : > { %3001 = dma.hbm_to_vmem [thread:$0]  (%p50_p5), %s343_s12, 1024, %s345_s28, [#allocation6 + $0x3] }
  0x64   : > { %s370_s23 = sshll.u32 %s4182_s1, 4  ;;  %s3478_s30 = smov [#allocation14]   ;;  %s371_s23 = int_to_ptr.hbm [resolvable:$true] %s370_s23 }
  0x65   : > { %3002 = dma.hbm_to_vmem [thread:$0]  (%p50_p5), %s357_s13, 1024, %s359_s18, [#allocation6 + $0x4] }
  0x66   : > { %s3703_s7 = sshll.u32 %s3478_s30, 4  ;;  %s3712_s20 = scalar_lea.vmem [#allocation12], %s2385_s25  ;;  %s373_s7 = int_to_ptr.vmem [resolvable:$true] %s3703_s7 }
  0x67   : > { %3003 = dma.hbm_to_vmem [thread:$0]  (%p50_p5), %s371_s23, 1024, %s373_s7, [#allocation6 + $0x5] }
  0x68   : > { %3422 = dma.done.wait (%p50_p5), [#allocation6], 1024 }
  0x69   : > { %3424 = vsyncadd (%p50_p5), [#allocation6], 4294966272 }
  0x6a   : > { %3426 = dma.done.wait (%p50_p5), [#allocation6 + $0x1], 1024 }
  0x6b   : > { %3428 = vsyncadd (%p50_p5), [#allocation6 + $0x1], 4294966272 }
  0x6c   : > { %3430 = dma.done.wait (%p50_p5), [#allocation6 + $0x2], 1024 }
  0x6d   : > { %3432 = vsyncadd (%p50_p5), [#allocation6 + $0x2], 4294966272 }
  0x6e   : > { %3434 = dma.done.wait (%p50_p5), [#allocation6 + $0x3], 1024 }
  0x6f   : > { %3436 = vsyncadd (%p50_p5), [#allocation6 + $0x3], 4294966272 }
  0x70   : > { %3438 = dma.done.wait (%p50_p5), [#allocation6 + $0x4], 1024 }
  0x71   : > { %3440 = vsyncadd (%p50_p5), [#allocation6 + $0x4], 4294966272 }
  0x72   : > { %3442 = dma.done.wait (%p50_p5), [#allocation6 + $0x5], 1024 }
  0x73   : > { %3444 = vsyncadd (%p50_p5), [#allocation6 + $0x5], 4294966272  ;;  %v2533_v0 = vld [vmem:[%s3655_s27 + $0xe0] sm:$0xf]  ;;  %v2831_v1 = vld [vmem:[%s3655_s27 + $0xec] sm:$0xf0] }
  0x74   : > { %v2517_v2 = vld [vmem:[%s3655_s27 + $0xc0] sm:$0xf]  ;;  %v2534_v3 = vor.u32 %v2831_v1, %v2533_v0  ;;  %v2827_v4 = vld [vmem:[%s3655_s27 + $0xcc] sm:$0xf0]  ;;  %v3479_v8 = vmov 0.0|0.0   ;;  %v3759_v21 = vld [vmem:[#allocation14 + $0x28] sm:$0xff] }
  0x75   : > { %v2518_v5 = vor.u32 %v2827_v4, %v2517_v2  ;;  %v2501_v6 = vld [vmem:[%s3655_s27 + $0xa0] sm:$0xf]  ;;  %v2823_v7 = vld [vmem:[%s3655_s27 + $0xac] sm:$0xf0]  ;;  %v3744_v9 = vunpack.c.l.bf16 %v3479_v8  ;;  %v2829_v22 = vld [vmem:[%s3655_s27 + $0xe4] sm:$0xf] }
  0x76   : > { %679 = vmatpush.bf16.msra.mxu0 %v2534_v3  ;;  %2975 = vmatpush.bf16.msra.mxu2 %v2534_v3  ;;  %v2502_v10 = vor.u32 %v2823_v7, %v2501_v6  ;;  %v2485_v11 = vld [vmem:[%s3655_s27 + $0x80] sm:$0xf]  ;;  %v2819_v12 = vld [vmem:[%s3655_s27 + $0x8c] sm:$0xf0]  ;;  %v2535_v23 = vld [vmem:[%s3655_s27 + $0xf0] sm:$0xf0] }
  0x77   : > { %4211 = vst [vmem:[#allocation43_spill] sm:$0xff] %v3744_v9  ;;  %v3750_v13 = vpack.c.bf16 %v3744_v9, %v3744_v9  ;;  %v3752_v14 = vld [vmem:[#allocation14 + $0x20] sm:$0xff]  ;;  %v2486_v15 = vor.u32 %v2819_v12, %v2485_v11  ;;  %v2469_v16 = vld [vmem:[%s3655_s27 + $0x60] sm:$0xf]  ;;  %v2538_v26 = vor.u32 %v2829_v22, %v2535_v23  ;;  %v2825_v35 = vld [vmem:[%s3655_s27 + $0xc4] sm:$0xf] }
  0x78   : > { %v2815_v17 = vld [vmem:[%s3655_s27 + $0x6c] sm:$0xf0]  ;;  %v2453_v19 = vld [vmem:[%s3655_s27 + $0x40] sm:$0xf]  ;;  %v2519_v36 = vld [vmem:[%s3655_s27 + $0xd0] sm:$0xf0] }
  0x79   : > { %2964 = vst [vmem:[#allocation14 + $0x20] sm:$0xff] %v3750_v13   ;;  %v2470_v18 = vor.u32 %v2815_v17, %v2469_v16  ;;  %v2811_v20 = vld [vmem:[%s3655_s27 + $0x4c] sm:$0xf0]  ;;  %v3764_v24 = vld [vmem:[#allocation14 + $0x10] sm:$0xff]  ;;  %2983 = vmatpush.bf16.msra.mxu3 %v2538_v26  ;;  %728 = vmatpush.bf16.msra.mxu1 %v2538_v26  ;;  %v2522_v37 = vor.u32 %v2825_v35, %v2519_v36  ;;  %v2541_v38 = vld [vmem:[%s3655_s27 + $0xe8] sm:$0xf] }
  0x7a   : > { %680 = vmatpush.bf16.msra.mxu0 %v2518_v5  ;;  %2976 = vmatpush.bf16.msra.mxu2 %v2518_v5  ;;  %2965 = vst [vmem:[#allocation14 + $0x28] sm:$0xff] %v3750_v13   ;;  %v2454_v25 = vor.u32 %v2811_v20, %v2453_v19  ;;  %v2437_v27 = vld [vmem:[%s3655_s27 + $0x20] sm:$0xf]  ;;  %v2807_v28 = vld [vmem:[%s3655_s27 + $0x2c] sm:$0xf0]  ;;  %v3798_v63 = vld [vmem:[#allocation14 + $0x18] sm:$0xff] }
  0x7b   : > { %2962 = vst [vmem:[#allocation14 + $0x10] sm:$0xff] %v3750_v13   ;;  %v2438_v29 = vor.u32 %v2807_v28, %v2437_v27  ;;  %v2421_v30 = vld [vmem:[%s3655_s27] sm:$0xf]  ;;  %v2803_v31 = vld [vmem:[%s3655_s27 + $0xc] sm:$0xf0]  ;;  %v3805_v8 = vld [vmem:[#allocation14 + $0x8] sm:$0xff] }
  0x7c   : > { %v2422_v32 = vor.u32 %v2803_v31, %v2421_v30  ;;  %v3771_v33 = vld [vmem:[#allocation14] sm:$0xff]  ;;  %v3773_v34 = vld [vmem:[#allocation14 + $0x30] sm:$0xff]  ;;  %v2832_v39 = vld [vmem:[%s3655_s27 + $0xf4] sm:$0xf0]  ;;  %2963 = vst [vmem:[#allocation14 + $0x18] sm:$0xff] %v3750_v13   ;;  %s4237_s21 = sld [smem:[#allocation57_spill]] }
  0x7d   : > { %2966 = vst [vmem:[#allocation14 + $0x30] sm:$0xff] %v3750_v13   ;;  %v2542_v40 = vor.u32 %v2832_v39, %v2541_v38  ;;  %v2637_v41 = vld [vmem:[%s3663_s11 + $0x70] sm:$0xf]  ;;  %v2848_v42 = vld [vmem:[%s3663_s11 + $0x74] sm:$0xf0]  ;;  %2984 = vmatpush.bf16.msra.mxu3 %v2522_v37  ;;  %729 = vmatpush.bf16.msra.mxu1 %v2522_v37  ;;  %p3030_p5 = scmp.eq.s32.totalorder %s3556_s17, 1 }
  0x7e   : > { %681 = vmatpush.bf16.msra.mxu0 %v2502_v10  ;;  %2977 = vmatpush.bf16.msra.mxu2 %v2502_v10  ;;  %v2821_v43 = vld [vmem:[%s3655_s27 + $0xa4] sm:$0xf]  ;;  %v2638_v44 = vor.u32 %v2848_v42, %v2637_v41  ;;  %v2503_v45 = vld [vmem:[%s3655_s27 + $0xb0] sm:$0xf0]  ;;  %v2525_v46 = vld [vmem:[%s3655_s27 + $0xc8] sm:$0xf] }
  0x7f   : > { %v2828_v47 = vld [vmem:[%s3655_s27 + $0xd4] sm:$0xf0]  ;;  %v2506_v48 = vor.u32 %v2821_v43, %v2503_v45  ;;  %v2629_v50 = vld [vmem:[%s3663_s11 + $0x60] sm:$0xf]  ;;  %v2846_v51 = vld [vmem:[%s3663_s11 + $0x64] sm:$0xf0] }
  0x80   : > { %v2526_v49 = vor.u32 %v2828_v47, %v2525_v46  ;;  %v2817_v52 = vld [vmem:[%s3655_s27 + $0x84] sm:$0xf]  ;;  %v2630_v53 = vor.u32 %v2846_v51, %v2629_v50  ;;  %v2487_v54 = vld [vmem:[%s3655_s27 + $0x90] sm:$0xf0]  ;;  %v2509_v55 = vld [vmem:[%s3655_s27 + $0xa8] sm:$0xf] }
  0x81   : > { %v2824_v56 = vld [vmem:[%s3655_s27 + $0xb4] sm:$0xf0]  ;;  %v2621_v57 = vld [vmem:[%s3663_s11 + $0x50] sm:$0xf]  ;;  %2985 = vmatpush.bf16.msra.mxu3 %v2506_v48  ;;  %v2490_v59 = vor.u32 %v2817_v52, %v2487_v54  ;;  %730 = vmatpush.bf16.msra.mxu1 %v2506_v48  ;;  %v2813_v61 = vld [vmem:[%s3655_s27 + $0x64] sm:$0xf] }
  0x82   : > { %682 = vmatpush.bf16.msra.mxu0 %v2486_v15  ;;  %2978 = vmatpush.bf16.msra.mxu2 %v2486_v15  ;;  %v2844_v58 = vld [vmem:[%s3663_s11 + $0x54] sm:$0xf0]  ;;  %v2510_v60 = vor.u32 %v2824_v56, %v2509_v55  ;;  %v2471_v62 = vld [vmem:[%s3655_s27 + $0x70] sm:$0xf0]  ;;  %v2493_v1 = vld [vmem:[%s3655_s27 + $0x88] sm:$0xf] }
  0x83   : > { %v2622_v0 = vor.u32 %v2844_v58, %v2621_v57  ;;  %v2820_v2 = vld [vmem:[%s3655_s27 + $0x94] sm:$0xf0]  ;;  %v2613_v3 = vld [vmem:[%s3663_s11 + $0x40] sm:$0xf]  ;;  %v2842_v4 = vld [vmem:[%s3663_s11 + $0x44] sm:$0xf0]  ;;  %v2474_v5 = vor.u32 %v2813_v61, %v2471_v62 }
  0x84   : > { %v2494_v6 = vor.u32 %v2820_v2, %v2493_v1  ;;  %v2614_v7 = vor.u32 %v2842_v4, %v2613_v3  ;;  %v3807_v10 = vld [vmem:[#allocation14 + $0x38] sm:$0xff]  ;;  %v2809_v11 = vld [vmem:[%s3655_s27 + $0x44] sm:$0xf]  ;;  %v2455_v12 = vld [vmem:[%s3655_s27 + $0x50] sm:$0xf0]  ;;  %s2207_s12 = sshll.u32 %s4237_s21, 4  ;;  %s2208_s12 = int_to_ptr.hbm [resolvable:$true] %s2207_s12 }
  0x85   : > { %2986 = vmatpush.bf16.msra.mxu3 %v2490_v59  ;;  %731 = vmatpush.bf16.msra.mxu1 %v2490_v59  ;;  %2967 = vst [vmem:[#allocation14 + $0x38] sm:$0xff] %v3750_v13   ;;  %v2458_v15 = vor.u32 %v2809_v11, %v2455_v12  ;;  %v2477_v16 = vld [vmem:[%s3655_s27 + $0x68] sm:$0xf]  ;;  %v2816_v17 = vld [vmem:[%s3655_s27 + $0x74] sm:$0xf0]  ;;  %v3845_v51 = vld [vmem:[#allocation13] sm:$0xff] }
  0x86   : > { %683 = vmatpush.bf16.msra.mxu0 %v2470_v18  ;;  %2979 = vmatpush.bf16.msra.mxu2 %v2470_v18  ;;  %v2478_v18 = vor.u32 %v2816_v17, %v2477_v16  ;;  %v2605_v19 = vld [vmem:[%s3663_s11 + $0x30] sm:$0xf]  ;;  %v2840_v20 = vld [vmem:[%s3663_s11 + $0x34] sm:$0xf0]  ;;  %v2805_v22 = vld [vmem:[%s3655_s27 + $0x24] sm:$0xf] }
  0x87   : > { %v2606_v23 = vor.u32 %v2840_v20, %v2605_v19  ;;  %v2461_v26 = vld [vmem:[%s3655_s27 + $0x48] sm:$0xf]  ;;  %v2812_v27 = vld [vmem:[%s3655_s27 + $0x54] sm:$0xf0]  ;;  %v2597_v30 = vld [vmem:[%s3663_s11 + $0x20] sm:$0xf] }
  0x88   : > { %v2838_v31 = vld [vmem:[%s3663_s11 + $0x24] sm:$0xf0]  ;;  %v2423_v36 = vld [vmem:[%s3655_s27 + $0x10] sm:$0xf0]  ;;  %v2808_v38 = vld [vmem:[%s3655_s27 + $0x34] sm:$0xf0] }
  0x89   : > { %2987 = vmatpush.bf16.msra.mxu3 %v2474_v5  ;;  %732 = vmatpush.bf16.msra.mxu1 %v2474_v5  ;;  %v2598_v35 = vor.u32 %v2838_v31, %v2597_v30  ;;  %v2445_v37 = vld [vmem:[%s3655_s27 + $0x28] sm:$0xf]  ;;  %v2589_v39 = vld [vmem:[%s3663_s11 + $0x10] sm:$0xf]  ;;  %v2804_v45 = vld [vmem:[%s3655_s27 + $0x14] sm:$0xf0] }
  0x8a   : > { %684 = vmatpush.bf16.msra.mxu0 %v2454_v25  ;;  %2980 = vmatpush.bf16.msra.mxu2 %v2454_v25  ;;  %v2439_v25 = vld [vmem:[%s3655_s27 + $0x30] sm:$0xf0]  ;;  %v2446_v42 = vor.u32 %v2808_v38, %v2445_v37  ;;  %v2581_v46 = vld [vmem:[%s3663_s11] sm:$0xf]  ;;  %v2834_v47 = vld [vmem:[%s3663_s11 + $0x4] sm:$0xf0] }
  0x8b   : > { %v2442_v28 = vor.u32 %v2805_v22, %v2439_v25  ;;  %v3840_v50 = vld [vmem:[#allocation13 + $0x8] sm:$0xff]  ;;  %v3849_v52 = vld [vmem:[#allocation13 + $0x10] sm:$0xff]  ;;  %v3861_v54 = vld [vmem:[#allocation13 + $0x20] sm:$0xff]  ;;  %s3480_s9 = smov 64   ;;  %s3481_s29 = smov 4  }
  0x8c   : > { %2968 = vst [vmem:[#allocation13 + $0x8] sm:$0xff] %v3750_v13   ;;  %v3866_v55 = vld [vmem:[#allocation13 + $0x28] sm:$0xff]  ;;  %v3873_v57 = vld [vmem:[#allocation13 + $0x30] sm:$0xff]  ;;  %v2830_v62 = vld [vmem:[%s3655_s27 + $0xec] sm:$0xf] }
  0x8d   : > { %2988 = vmatpush.bf16.msra.mxu3 %v2458_v15  ;;  %733 = vmatpush.bf16.msra.mxu1 %v2458_v15  ;;  %2969 = vst [vmem:[#allocation13 + $0x10] sm:$0xff] %v3750_v13   ;;  %v3888_v1 = vld [vmem:[#allocation13 + $0x38] sm:$0xff]  ;;  %v2527_v4 = vld [vmem:[%s3655_s27 + $0xd8] sm:$0xf0]  ;;  %v2841_v37 = vld [vmem:[%s3663_s11 + $0x44] sm:$0xf] }
  0x8e   : > { %685 = vmatpush.bf16.msra.mxu0 %v2438_v29  ;;  %2981 = vmatpush.bf16.msra.mxu2 %v2438_v29  ;;  %v2462_v29 = vor.u32 %v2812_v27, %v2461_v26  ;;  %2971 = vst [vmem:[#allocation13 + $0x20] sm:$0xff] %v3750_v13   ;;  %v2826_v3 = vld [vmem:[%s3655_s27 + $0xcc] sm:$0xf]  ;;  %v2639_v11 = vld [vmem:[%s3663_s11 + $0x78] sm:$0xf0] }
  0x8f   : > { %2972 = vst [vmem:[#allocation13 + $0x28] sm:$0xff] %v3750_v13   ;;  %v2530_v5 = vor.u32 %v2826_v3, %v2527_v4  ;;  %v2511_v16 = vld [vmem:[%s3655_s27 + $0xb8] sm:$0xf0]  ;;  %v2631_v19 = vld [vmem:[%s3663_s11 + $0x68] sm:$0xf0] }
  0x90   : > { %2973 = vst [vmem:[#allocation13 + $0x30] sm:$0xff] %v3750_v13   ;;  %v2818_v22 = vld [vmem:[%s3655_s27 + $0x8c] sm:$0xf]  ;;  %v2843_v27 = vld [vmem:[%s3663_s11 + $0x54] sm:$0xf] }
  0x91   : > { %2989 = vmatpush.bf16.msra.mxu3 %v2442_v28  ;;  %734 = vmatpush.bf16.msra.mxu1 %v2442_v28  ;;  %2974 = vst [vmem:[#allocation13 + $0x38] sm:$0xff] %v3750_v13   ;;  %v2623_v28 = vld [vmem:[%s3663_s11 + $0x58] sm:$0xf0]  ;;  %v2814_v31 = vld [vmem:[%s3655_s27 + $0x6c] sm:$0xf] }
  0x92   : > { %686 = vmatpush.bf16.msra.mxu0 %v2422_v32  ;;  %2982 = vmatpush.bf16.msra.mxu2 %v2422_v32  ;;  %v2801_v32 = vld [vmem:[%s3655_s27 + $0x4] sm:$0xf]  ;;  %v2615_v38 = vld [vmem:[%s3663_s11 + $0x48] sm:$0xf0] }
  0x93   : > { %v2426_v41 = vor.u32 %v2801_v32, %v2423_v36  ;;  %v2479_v32 = vld [vmem:[%s3655_s27 + $0x78] sm:$0xf0]  ;;  %v2599_v3 = vld [vmem:[%s3663_s11 + $0x28] sm:$0xf0] }
  0x95   : > { %687 = vmatmul.bf16.vlgmr.msra.gmra.mxu0 %v3771_v33  ;;  %707 = vmatmul.bf16.vlgmr.msra.gmra.mxu2 %v3752_v14 }
  0x96   : > { %777 = vmatpush.bf16.msrb.mxu2 %v2542_v40  ;;  %1003 = vmatpush.bf16.msrb.mxu0 %v2638_v44  ;;  %v2836_v40 = vld [vmem:[%s3663_s11 + $0x14] sm:$0xf0]  ;;  %v2429_v44 = vld [vmem:[%s3655_s27 + $0x8] sm:$0xf] }
  0x97   : > { %v2590_v43 = vor.u32 %v2836_v40, %v2589_v39  ;;  %2990 = vmatpush.bf16.msra.mxu3 %v2426_v41  ;;  %735 = vmatpush.bf16.msra.mxu1 %v2426_v41  ;;  %v2430_v48 = vor.u32 %v2804_v45, %v2429_v44  ;;  %v2618_v39 = vor.u32 %v2841_v37, %v2615_v38  ;;  %v2810_v40 = vld [vmem:[%s3655_s27 + $0x4c] sm:$0xf]  ;;  %v2463_v41 = vld [vmem:[%s3655_s27 + $0x58] sm:$0xf0]  ;;  %v2839_v44 = vld [vmem:[%s3663_s11 + $0x34] sm:$0xf] }
  0x98   : > { %v2607_v45 = vld [vmem:[%s3663_s11 + $0x38] sm:$0xf0] }
  0x9a   : > { %778 = vmatpush.bf16.msrb.mxu2 %v2526_v49  ;;  %1004 = vmatpush.bf16.msrb.mxu0 %v2630_v53  ;;  %v2582_v49 = vor.u32 %v2834_v47, %v2581_v46  ;;  %v3856_v53 = vld [vmem:[#allocation13 + $0x18] sm:$0xff]  ;;  %v2610_v46 = vor.u32 %v2839_v44, %v2607_v45 }
  0x9b   : > { %756 = vmatmul.bf16.vlgmr.msra.gmra.mxu3 %v3752_v14  ;;  %736 = vmatmul.bf16.vlgmr.msra.gmra.mxu1 %v3771_v33  ;;  %2970 = vst [vmem:[#allocation13 + $0x18] sm:$0xff] %v3750_v13   ;;  %v2822_v13 = vld [vmem:[%s3655_s27 + $0xac] sm:$0xf] }
  0x9c   : > { %v2514_v17 = vor.u32 %v2822_v13, %v2511_v16  ;;  %v2835_v13 = vld [vmem:[%s3663_s11 + $0x14] sm:$0xf]  ;;  %v2591_v16 = vld [vmem:[%s3663_s11 + $0x18] sm:$0xf0] }
  0x9e   : > { %779 = vmatpush.bf16.msrb.mxu2 %v2510_v60  ;;  %1005 = vmatpush.bf16.msrb.mxu0 %v2622_v0  ;;  %v2543_v0 = vld [vmem:[%s3655_s27 + $0xf8] sm:$0xf0] }
  0x9f   : > { %v2546_v2 = vor.u32 %v2830_v62, %v2543_v0 }
  0xa1   : > { %826 = vmatpush.bf16.msrb.mxu3 %v2546_v2  ;;  %v2837_v2 = vld [vmem:[%s3663_s11 + $0x24] sm:$0xf] }
  0xa2   : > { %780 = vmatpush.bf16.msrb.mxu2 %v2494_v6  ;;  %1006 = vmatpush.bf16.msrb.mxu0 %v2614_v7  ;;  %v2847_v7 = vld [vmem:[%s3663_s11 + $0x74] sm:$0xf]  ;;  %v2602_v4 = vor.u32 %v2837_v2, %v2599_v3 }
  0xa3   : > { %v2642_v12 = vor.u32 %v2847_v7, %v2639_v11  ;;  %v2431_v7 = vld [vmem:[%s3655_s27 + $0x18] sm:$0xf0] }
  0xa5   : > { %692 = vmatmul.bf16.gmra.mxu0 %v3805_v8  ;;  %712 = vmatmul.bf16.gmra.mxu2 %v3759_v21 }
  0xa6   : > { %781 = vmatpush.bf16.msrb.mxu2 %v2478_v18  ;;  %1007 = vmatpush.bf16.msrb.mxu0 %v2606_v23  ;;  %v2845_v18 = vld [vmem:[%s3663_s11 + $0x64] sm:$0xf]  ;;  %v2495_v23 = vld [vmem:[%s3655_s27 + $0x98] sm:$0xf0] }
  0xa7   : > { %827 = vmatpush.bf16.msrb.mxu3 %v2530_v5  ;;  %1052 = vmatpush.bf16.msrb.mxu1 %v2642_v12  ;;  %v2634_v20 = vor.u32 %v2845_v18, %v2631_v19  ;;  %v2498_v25 = vor.u32 %v2818_v22, %v2495_v23  ;;  %v2802_v5 = vld [vmem:[%s3655_s27 + $0xc] sm:$0xf] }
  0xa8   : > { %v2434_v11 = vor.u32 %v2802_v5, %v2431_v7  ;;  %v2583_v22 = vld [vmem:[%s3663_s11 + $0x8] sm:$0xf0] }
  0xaa   : > { %782 = vmatpush.bf16.msrb.mxu2 %v2462_v29  ;;  %1008 = vmatpush.bf16.msrb.mxu0 %v2598_v35  ;;  %v2626_v29 = vor.u32 %v2843_v27, %v2623_v28  ;;  %v2482_v35 = vor.u32 %v2814_v31, %v2479_v32 }
  0xab   : > { %761 = vmatmul.bf16.gmra.mxu3 %v3759_v21  ;;  %741 = vmatmul.bf16.gmra.mxu1 %v3805_v8 }
  0xac   : > { %828 = vmatpush.bf16.msrb.mxu3 %v2514_v17  ;;  %1053 = vmatpush.bf16.msrb.mxu1 %v2634_v20  ;;  %v2594_v17 = vor.u32 %v2835_v13, %v2591_v16  ;;  %v2833_v20 = vld [vmem:[%s3663_s11 + $0x4] sm:$0xf]  ;;  %s4236_s11 = sld [smem:[#allocation58_spill]] }
  0xae   : > { %783 = vmatpush.bf16.msrb.mxu2 %v2446_v42  ;;  %1009 = vmatpush.bf16.msrb.mxu0 %v2590_v43  ;;  %v2466_v42 = vor.u32 %v2810_v40, %v2463_v41 }
  0xb0   : > { %829 = vmatpush.bf16.msrb.mxu3 %v2498_v25  ;;  %1054 = vmatpush.bf16.msrb.mxu1 %v2626_v29  ;;  %v2586_v25 = vor.u32 %v2833_v20, %v2583_v22 }
  0xb2   : > { %784 = vmatpush.bf16.msrb.mxu2 %v2430_v48  ;;  %1010 = vmatpush.bf16.msrb.mxu0 %v2582_v49  ;;  %v2806_v48 = vld [vmem:[%s3655_s27 + $0x2c] sm:$0xf]  ;;  %v2447_v49 = vld [vmem:[%s3655_s27 + $0x38] sm:$0xf0]  ;;  %s2221_s25 = sshll.u32 %s4236_s11, 4  ;;  %s2222_s25 = int_to_ptr.hbm [resolvable:$true] %s2221_s25 }
  0xb3   : > { %v2450_v62 = vor.u32 %v2806_v48, %v2447_v49 }
  0xb4   : > { %830 = vmatpush.bf16.msrb.mxu3 %v2482_v35  ;;  %1055 = vmatpush.bf16.msrb.mxu1 %v2618_v39 }
  0xb5   : > { %697 = vmatmul.bf16.gmra.mxu0 %v3764_v24  ;;  %717 = vmatmul.bf16.gmra.mxu2 %v3773_v34 }
  0xb8   : > { %831 = vmatpush.bf16.msrb.mxu3 %v2466_v42  ;;  %1056 = vmatpush.bf16.msrb.mxu1 %v2610_v46 }
  0xbb   : > { %766 = vmatmul.bf16.gmra.mxu3 %v3773_v34  ;;  %746 = vmatmul.bf16.gmra.mxu1 %v3764_v24 }
  0xbc   : > { %832 = vmatpush.bf16.msrb.mxu3 %v2450_v62  ;;  %1057 = vmatpush.bf16.msrb.mxu1 %v2602_v4 }
  0xc0   : > { %833 = vmatpush.bf16.msrb.mxu3 %v2434_v11  ;;  %1058 = vmatpush.bf16.msrb.mxu1 %v2594_v17 }
  0xc4   : > { %1059 = vmatpush.bf16.msrb.mxu1 %v2586_v25 }
  0xc5   : > { %702 = vmatmul.bf16.gmra.mxu0 %v3798_v63  ;;  %722 = vmatmul.bf16.gmra.mxu2 %v3807_v10 }
  0xcb   : > { %771 = vmatmul.bf16.gmra.mxu3 %v3807_v10  ;;  %751 = vmatmul.bf16.gmra.mxu1 %v3798_v63 }
  0xd5   : > { %785 = vmatmul.bf16.vlgmr.msrb.gmra.mxu2 %v3771_v33  ;;  %1011 = vmatmul.bf16.vlgmr.msrb.gmra.mxu0 %v3845_v51 }
  0xdb   : > { %834 = vmatmul.bf16.vlgmr.msrb.gmra.mxu3 %v3771_v33  ;;  %1060 = vmatmul.bf16.vlgmr.msrb.gmra.mxu1 %v3845_v51 }
  0xe5   : > { %790 = vmatmul.bf16.gmra.mxu2 %v3805_v8  ;;  %1016 = vmatmul.bf16.gmra.mxu0 %v3840_v50 }
  0xeb   : > { %839 = vmatmul.bf16.gmra.mxu3 %v3805_v8  ;;  %1065 = vmatmul.bf16.gmra.mxu1 %v3840_v50 }
  0xf5   : > { %795 = vmatmul.bf16.gmra.mxu2 %v3764_v24  ;;  %1021 = vmatmul.bf16.gmra.mxu0 %v3849_v52 }
  0xfb   : > { %844 = vmatmul.bf16.gmra.mxu3 %v3764_v24  ;;  %1070 = vmatmul.bf16.gmra.mxu1 %v3849_v52 }
 0x105   : > { %800 = vmatmul.bf16.gmra.mxu2 %v3798_v63  ;;  %1026 = vmatmul.bf16.gmra.mxu0 %v3856_v53 }
 0x10b   : > { %849 = vmatmul.bf16.gmra.mxu3 %v3798_v63  ;;  %1075 = vmatmul.bf16.gmra.mxu1 %v3856_v53 }
 0x112   : > { %v3871_v56 = vpop.f32.mrf.mxu0 }
 0x115   : > { %805 = vmatmul.bf16.gmra.mxu2 %v3752_v14  ;;  %1031 = vmatmul.bf16.gmra.mxu0 %v3861_v54 }
 0x118   : > { %v3878_v58 = vpop.f32.mrf.mxu2  ;;  %v3937_v23 = vpop.f32.mrf.mxu1 }
 0x11a   : > { %v3880_v59 = vpop.f32.mrf.mxu0 }
 0x11b   : > { %v1141_v2 = vpack.c.bf16 %v3880_v59, %v3871_v56  ;;  %854 = vmatmul.bf16.gmra.mxu3 %v3752_v14  ;;  %1080 = vmatmul.bf16.gmra.mxu1 %v3861_v54 }
 0x11e   : > { %v3915_v36 = vpop.f32.mrf.mxu3 }
 0x120   : > { %v3882_v60 = vpop.f32.mrf.mxu2  ;;  %v3943_v31 = vpop.f32.mrf.mxu1 }
 0x121   : > { %v1145_v45 = vpack.c.bf16 %v3882_v60, %v3878_v58 }
 0x122   : > { %v3884_v61 = vpop.f32.mrf.mxu0 }
 0x125   : > { %810 = vmatmul.bf16.gmra.mxu2 %v3759_v21  ;;  %1036 = vmatmul.bf16.gmra.mxu0 %v3866_v55 }
 0x126   : > { %v3927_v0 = vpop.f32.mrf.mxu3 }
 0x127   : > { %v1379_v52 = vpack.c.bf16 %v3927_v0, %v3915_v36  ;;  %v1375_v36 = vpack.c.bf16 %v3943_v31, %v3937_v23 }
 0x128   : > { %v3895_v6 = vpop.f32.mrf.mxu2  ;;  %v742_v39 = vpop.f32.mrf.mxu1 }
 0x12a   : > { %v3899_v15 = vpop.f32.mrf.mxu0 }
 0x12b   : > { %859 = vmatmul.bf16.gmra.mxu3 %v3759_v21  ;;  %1085 = vmatmul.bf16.gmra.mxu1 %v3866_v55 }
 0x12e   : > { %v762_v19 = vpop.f32.mrf.mxu3 }
 0x130   : > { %v3907_v26 = vpop.f32.mrf.mxu2  ;;  %v744_v44 = vpop.f32.mrf.mxu1 }
 0x131   : > { %v1146_v41 = vpack.c.bf16 %v3907_v26, %v3895_v6  ;;  %v1142_v26 = vpack.c.bf16 %v3899_v15, %v3884_v61  ;;  %v1376_v63 = vpack.c.bf16 %v744_v44, %v742_v39 }
 0x132   : > { %v3911_v30 = vpop.f32.mrf.mxu0 }
 0x135   : > { %815 = vmatmul.bf16.gmra.mxu2 %v3773_v34  ;;  %1041 = vmatmul.bf16.gmra.mxu0 %v3873_v57 }
 0x136   : > { %v764_v29 = vpop.f32.mrf.mxu3 }
 0x137   : > { %v1380_v4 = vpack.c.bf16 %v764_v29, %v762_v19  ;;  %v2857_v29 = vld [vmem:[#allocation3] sm:$0xff] }
 0x138   : > { %v718_v43 = vpop.f32.mrf.mxu2  ;;  %v747_v49 = vpop.f32.mrf.mxu1 }
 0x13a   : > { %v700_v47 = vpop.f32.mrf.mxu0 }
 0x13b   : > { %v1143_v6 = vpack.c.bf16 %v700_v47, %v3911_v30  ;;  %864 = vmatmul.bf16.gmra.mxu3 %v3773_v34  ;;  %1090 = vmatmul.bf16.gmra.mxu1 %v3873_v57  ;;  %v2865_v34 = vld [vmem:[#allocation4] sm:$0xff] }
 0x13e   : > { %v767_v38 = vpop.f32.mrf.mxu3 }
 0x140   : > { %v720_v12 = vpop.f32.mrf.mxu2  ;;  %v749_v62 = vpop.f32.mrf.mxu1 }
 0x141   : > { %v1147_v40 = vpack.c.bf16 %v720_v12, %v718_v43  ;;  %v1377_v11 = vpack.c.bf16 %v749_v62, %v747_v49 }
 0x142   : > { %v703_v18 = vpop.f32.mrf.mxu0 }
 0x145   : > { %820 = vmatmul.bf16.gmra.mxu2 %v3807_v10  ;;  %1046 = vmatmul.bf16.gmra.mxu0 %v3888_v1 }
 0x146   : > { %v769_v42 = vpop.f32.mrf.mxu3 }
 0x147   : > { %v1381_v30 = vpack.c.bf16 %v769_v42, %v767_v38 }
 0x148   : > { %v723_v27 = vpop.f32.mrf.mxu2  ;;  %v752_v61 = vpop.f32.mrf.mxu1 }
 0x14a   : > { %v705_v28 = vpop.f32.mrf.mxu0 }
 0x14b   : > { %v1144_v8 = vpack.c.bf16 %v705_v28, %v703_v18  ;;  %869 = vmatmul.bf16.gmra.mxu3 %v3807_v10  ;;  %1095 = vmatmul.bf16.gmra.mxu1 %v3888_v1  ;;  %v2858_v1 = vld [vmem:[#allocation3 + $0x8] sm:$0xff] }
 0x14e   : > { %v772_v48 = vpop.f32.mrf.mxu3 }
 0x150   : > { %v725_v32 = vpop.f32.mrf.mxu2  ;;  %v754_v59 = vpop.f32.mrf.mxu1 }
 0x151   : > { %v1148_v35 = vpack.c.bf16 %v725_v32, %v723_v27  ;;  %v1378_v5 = vpack.c.bf16 %v754_v59, %v752_v61  ;;  %v2867_v59 = vld [vmem:[#allocation4 + $0x10] sm:$0xff] }
 0x152   : > { %v3945_v37 = vpop.f32.mrf.mxu0 }
 0x153   : > { %1197 = vmatpush.bf16.msra.mxu2 %v1148_v35 }
 0x156   : > { %v774_v60 = vpop.f32.mrf.mxu3 }
 0x157   : > { %1198 = vmatpush.bf16.msra.mxu2 %v1147_v40  ;;  %v1382_v3 = vpack.c.bf16 %v774_v60, %v772_v48 }
 0x158   : > { %v3948_v33 = vpop.f32.mrf.mxu2  ;;  %v3998_v55 = vpop.f32.mrf.mxu1 }
 0x159   : > { %1552 = vmatpush.bf16.msra.mxu1 %v1382_v3  ;;  %v2859_v3 = vld [vmem:[#allocation3 + $0x10] sm:$0xff] }
 0x15a   : > { %v3952_v51 = vpop.f32.mrf.mxu0 }
 0x15b   : > { %1199 = vmatpush.bf16.msra.mxu2 %v1146_v41 }
 0x15d   : > { %1553 = vmatpush.bf16.msra.mxu1 %v1381_v30 }
 0x15e   : > { %v4002_v40 = vpop.f32.mrf.mxu3 }
 0x15f   : > { %1200 = vmatpush.bf16.msra.mxu2 %v1145_v45 }
 0x160   : > { %v3957_v43 = vpop.f32.mrf.mxu2  ;;  %v4000_v38 = vpop.f32.mrf.mxu1 }
 0x161   : > { %1554 = vmatpush.bf16.msra.mxu1 %v1380_v4 }
 0x162   : > { %v3959_v46 = vpop.f32.mrf.mxu0 }
 0x163   : > { %1201 = vmatpush.bf16.msra.mxu2 %v1144_v8  ;;  %v2866_v8 = vld [vmem:[#allocation4 + $0x8] sm:$0xff] }
 0x165   : > { %1555 = vmatpush.bf16.msra.mxu1 %v1379_v52 }
 0x167   : > { %1202 = vmatpush.bf16.msra.mxu2 %v1143_v6  ;;  %v4006_v6 = vpop.f32.mrf.mxu3 }
 0x168   : > { %v3963_v50 = vpop.f32.mrf.mxu2  ;;  %v4004_v45 = vpop.f32.mrf.mxu1 }
 0x169   : > { %1556 = vmatpush.bf16.msra.mxu1 %v1378_v5 }
 0x16a   : > { %v3967_v58 = vpop.f32.mrf.mxu0 }
 0x16b   : > { %1203 = vmatpush.bf16.msra.mxu2 %v1142_v26  ;;  %v1118_v30 = vpack.c.bf16 %v3967_v58, %v3959_v46  ;;  %v1399_v46 = vpack.c.bf16 %v3957_v43, %v3948_v33  ;;  %v2873_v58 = vld [vmem:[#allocation5] sm:$0xff] }
 0x16c   : > { %v2861_v33 = vld [vmem:[#allocation3 + $0x20] sm:$0xff] }
 0x16d   : > { %1557 = vmatpush.bf16.msra.mxu1 %v1377_v11  ;;  %v2850_v11 = vld [vmem:[#allocation2 + $0x8] sm:$0xff] }
 0x16f   : > { %1204 = vmatpush.bf16.msra.mxu2 %v1141_v2  ;;  %v4017_v61 = vpop.f32.mrf.mxu3 }
 0x170   : > { %v3972_v24 = vpop.f32.mrf.mxu2  ;;  %v4010_v62 = vpop.f32.mrf.mxu1 }
 0x171   : > { %1558 = vmatpush.bf16.msra.mxu1 %v1376_v63  ;;  %v1400_v5 = vpack.c.bf16 %v3972_v24, %v3963_v50  ;;  %v2868_v50 = vld [vmem:[#allocation4 + $0x18] sm:$0xff] }
 0x172   : > { %v3974_v47 = vpop.f32.mrf.mxu0  ;;  %1205 = vmatmul.bf16.vlgmr.msra.gmra.mxu2 %v2857_v29  ;;  %v2871_v29 = vld [vmem:[#allocation4 + $0x30] sm:$0xff] }
 0x175   : > { %1559 = vmatpush.bf16.msra.mxu1 %v1375_v36 }
 0x178   : > { %v3979_v15 = vpop.f32.mrf.mxu2  ;;  %1560 = vmatmul.bf16.vlgmr.msra.gmra.mxu1 %v2865_v34  ;;  %v4021_v52 = vpop.f32.mrf.mxu1  ;;  %v2877_v34 = vld [vmem:[#allocation5 + $0x20] sm:$0xff] }
 0x17a   : > { %v3981_v56 = vpop.f32.mrf.mxu0 }
 0x17b   : > { %v1119_v60 = vpack.c.bf16 %v3981_v56, %v3974_v47  ;;  %v1117_v47 = vpack.c.bf16 %v3952_v51, %v3945_v37  ;;  %v2849_v56 = vld [vmem:[#allocation2] sm:$0xff]  ;;  %v2860_v51 = vld [vmem:[#allocation3 + $0x18] sm:$0xff] }
 0x180   : > { %v3984_v7 = vpop.f32.mrf.mxu2  ;;  %v4029_v37 = vpop.f32.mrf.mxu1 }
 0x181   : > { %v1401_v4 = vpack.c.bf16 %v3984_v7, %v3979_v15  ;;  %v4027_v15 = vpop.f32.mrf.mxu3 }
 0x182   : > { %v1027_v12 = vpop.f32.mrf.mxu0  ;;  %1210 = vmatmul.bf16.gmra.mxu2 %v2858_v1 }
 0x188   : > { %v3989_v0 = vpop.f32.mrf.mxu2  ;;  %1565 = vmatmul.bf16.gmra.mxu1 %v2866_v8  ;;  %v4031_v7 = vpop.f32.mrf.mxu1  ;;  %v2855_v8 = vld [vmem:[#allocation2 + $0x30] sm:$0xff] }
 0x189   : > { %v4033_v24 = vpop.f32.mrf.mxu3 }
 0x18a   : > { %v1029_v13 = vpop.f32.mrf.mxu0 }
 0x18b   : > { %v1120_v49 = vpack.c.bf16 %v1029_v13, %v1027_v12  ;;  %v2874_v12 = vld [vmem:[#allocation5 + $0x8] sm:$0xff]  ;;  %v2869_v13 = vld [vmem:[#allocation4 + $0x20] sm:$0xff] }
 0x190   : > { %v803_v53 = vpop.f32.mrf.mxu2  ;;  %v4035_v63 = vpop.f32.mrf.mxu1 }
 0x191   : > { %v1402_v2 = vpack.c.bf16 %v803_v53, %v3989_v0  ;;  %v4037_v43 = vpop.f32.mrf.mxu3  ;;  %v2851_v0 = vld [vmem:[#allocation2 + $0x10] sm:$0xff] }
 0x192   : > { %v1032_v16 = vpop.f32.mrf.mxu0  ;;  %1215 = vmatmul.bf16.gmra.mxu2 %v2859_v3  ;;  %v2856_v3 = vld [vmem:[#allocation2 + $0x38] sm:$0xff] }
 0x198   : > { %v806_v17 = vpop.f32.mrf.mxu2  ;;  %1570 = vmatmul.bf16.gmra.mxu1 %v2867_v59  ;;  %v4039_v36 = vpop.f32.mrf.mxu1 }
 0x199   : > { %v4041_v53 = vpop.f32.mrf.mxu3 }
 0x19a   : > { %v1034_v18 = vpop.f32.mrf.mxu0 }
 0x19b   : > { %v1121_v44 = vpack.c.bf16 %v1034_v18, %v1032_v16  ;;  %v2875_v16 = vld [vmem:[#allocation5 + $0x10] sm:$0xff]  ;;  %v2862_v18 = vld [vmem:[#allocation3 + $0x28] sm:$0xff] }
 0x1a0   : > { %v808_v19 = vpop.f32.mrf.mxu2 }
 0x1a1   : > { %v1403_v26 = vpack.c.bf16 %v808_v19, %v806_v17  ;;  %v4043_v17 = vpop.f32.mrf.mxu1  ;;  %v4045_v19 = vpop.f32.mrf.mxu3 }
 0x1a2   : > { %v1037_v14 = vpop.f32.mrf.mxu0  ;;  %1220 = vmatmul.bf16.gmra.mxu2 %v2860_v51 }
 0x1a8   : > { %v811_v20 = vpop.f32.mrf.mxu2  ;;  %1575 = vmatmul.bf16.gmra.mxu1 %v2868_v50 }
 0x1aa   : > { %v1039_v22 = vpop.f32.mrf.mxu0 }
 0x1ab   : > { %v1122_v41 = vpack.c.bf16 %v1039_v22, %v1037_v14  ;;  %v4047_v14 = vpop.f32.mrf.mxu1  ;;  %v2870_v22 = vld [vmem:[#allocation4 + $0x28] sm:$0xff] }
 0x1b0   : > { %v813_v23 = vpop.f32.mrf.mxu2 }
 0x1b1   : > { %v1404_v48 = vpack.c.bf16 %v813_v23, %v811_v20  ;;  %v2852_v20 = vld [vmem:[#allocation2 + $0x18] sm:$0xff] }
 0x1b2   : > { %v1042_v25 = vpop.f32.mrf.mxu0  ;;  %1225 = vmatmul.bf16.gmra.mxu2 %v2861_v33  ;;  %v2876_v23 = vld [vmem:[#allocation5 + $0x18] sm:$0xff] }
 0x1b8   : > { %v816_v54 = vpop.f32.mrf.mxu2  ;;  %1580 = vmatmul.bf16.gmra.mxu1 %v2869_v13 }
 0x1ba   : > { %v1044_v27 = vpop.f32.mrf.mxu0 }
 0x1bb   : > { %v1123_v57 = vpack.c.bf16 %v1044_v27, %v1042_v25  ;;  %v4049_v25 = vpop.f32.mrf.mxu1  ;;  %v2863_v27 = vld [vmem:[#allocation3 + $0x30] sm:$0xff] }
 0x1c0   : > { %v818_v21 = vpop.f32.mrf.mxu2 }
 0x1c1   : > { %v1405_v42 = vpack.c.bf16 %v818_v21, %v816_v54  ;;  %v4051_v54 = vpop.f32.mrf.mxu3  ;;  %v2853_v21 = vld [vmem:[#allocation2 + $0x20] sm:$0xff] }
 0x1c2   : > { %v1047_v28 = vpop.f32.mrf.mxu0  ;;  %1230 = vmatmul.bf16.gmra.mxu2 %v2862_v18 }
 0x1c8   : > { %v821_v31 = vpop.f32.mrf.mxu2  ;;  %1585 = vmatmul.bf16.gmra.mxu1 %v2870_v22 }
 0x1ca   : > { %v1049_v32 = vpop.f32.mrf.mxu0 }
 0x1cb   : > { %v1124_v35 = vpack.c.bf16 %v1049_v32, %v1047_v28  ;;  %v4053_v28 = vpop.f32.mrf.mxu1 }
 0x1cc   : > { %4212 = vst [vmem:[#allocation44_spill] sm:$0xff] %v4053_v28 }
 0x1cd   : > { %1294 = vmatpush.bf16.msra.mxu3 %v1124_v35  ;;  %v2864_v35 = vld [vmem:[#allocation3 + $0x38] sm:$0xff] }
 0x1d0   : > { %v823_v10 = vpop.f32.mrf.mxu2 }
 0x1d1   : > { %v1406_v39 = vpack.c.bf16 %v823_v10, %v821_v31  ;;  %1295 = vmatpush.bf16.msra.mxu3 %v1123_v57  ;;  %v4055_v31 = vpop.f32.mrf.mxu3  ;;  %v2854_v10 = vld [vmem:[#allocation2 + $0x28] sm:$0xff] }
 0x1d2   : > { %1235 = vmatmul.bf16.gmra.mxu2 %v2863_v27 }
 0x1d3   : > { %1455 = vmatpush.bf16.msra.mxu0 %v1406_v39  ;;  %v4057_v32 = vpop.f32.mrf.mxu1  ;;  %v2872_v39 = vld [vmem:[#allocation4 + $0x38] sm:$0xff] }
 0x1d4   : > { %4213 = vst [vmem:[#allocation45_spill] sm:$0xff] %v4057_v32 }
 0x1d5   : > { %1296 = vmatpush.bf16.msra.mxu3 %v1122_v41  ;;  %v2878_v41 = vld [vmem:[#allocation5 + $0x28] sm:$0xff] }
 0x1d7   : > { %1456 = vmatpush.bf16.msra.mxu0 %v1405_v42 }
 0x1d8   : > { %1590 = vmatmul.bf16.gmra.mxu1 %v2871_v29 }
 0x1d9   : > { %1297 = vmatpush.bf16.msra.mxu3 %v1121_v44  ;;  %v4059_v57 = vpop.f32.mrf.mxu3 }
 0x1db   : > { %1457 = vmatpush.bf16.msra.mxu0 %v1404_v48  ;;  %v4061_v1 = vpop.f32.mrf.mxu1 }
 0x1dc   : > { %4214 = vst [vmem:[#allocation46_spill] sm:$0xff] %v4061_v1 }
 0x1dd   : > { %1298 = vmatpush.bf16.msra.mxu3 %v1120_v49  ;;  %v2879_v49 = vld [vmem:[#allocation5 + $0x30] sm:$0xff] }
 0x1df   : > { %1458 = vmatpush.bf16.msra.mxu0 %v1403_v26 }
 0x1e1   : > { %1299 = vmatpush.bf16.msra.mxu3 %v1119_v60  ;;  %v4063_v42 = vpop.f32.mrf.mxu3 }
 0x1e2   : > { %1240 = vmatmul.bf16.gmra.mxu2 %v2864_v35 }
 0x1e3   : > { %1459 = vmatpush.bf16.msra.mxu0 %v1402_v2  ;;  %v4065_v44 = vpop.f32.mrf.mxu1 }
 0x1e4   : > { %4215 = vst [vmem:[#allocation47_spill] sm:$0xff] %v4065_v44 }
 0x1e5   : > { %1300 = vmatpush.bf16.msra.mxu3 %v1118_v30 }
 0x1e7   : > { %1460 = vmatpush.bf16.msra.mxu0 %v1401_v4 }
 0x1e8   : > { %1595 = vmatmul.bf16.gmra.mxu1 %v2872_v39 }
 0x1e9   : > { %1301 = vmatpush.bf16.msra.mxu3 %v1117_v47  ;;  %v4067_v48 = vpop.f32.mrf.mxu3 }
 0x1eb   : > { %1461 = vmatpush.bf16.msra.mxu0 %v1400_v5 }
 0x1ec   : > { %1302 = vmatmul.bf16.vlgmr.msra.gmra.mxu3 %v2849_v56  ;;  %v2880_v56 = vld [vmem:[#allocation5 + $0x38] sm:$0xff] }
 0x1ef   : > { %1462 = vmatpush.bf16.msra.mxu0 %v1399_v46 }
 0x1f1   : > { %v4069_v2 = vpop.f32.mrf.mxu3 }
 0x1f2   : > { %1463 = vmatmul.bf16.vlgmr.msra.gmra.mxu0 %v2873_v58  ;;  %4216 = vst [vmem:[#allocation48_spill] sm:$0xff] %v4069_v2 }
 0x1f5   : > { %v1206_v26 = vpop.f32.mrf.mxu2  ;;  %v1561_v60 = vpop.f32.mrf.mxu1 }
 0x1f9   : > { %v4071_v47 = vpop.f32.mrf.mxu3 }
 0x1fa   : > { %4217 = vst [vmem:[#allocation49_spill] sm:$0xff] %v4071_v47 }
 0x1fc   : > { %1307 = vmatmul.bf16.gmra.mxu3 %v2850_v11 }
 0x1fd   : > { %v1208_v30 = vpop.f32.mrf.mxu2  ;;  %v1563_v4 = vpop.f32.mrf.mxu1 }
 0x201   : > { %v4073_v46 = vpop.f32.mrf.mxu3 }
 0x202   : > { %1468 = vmatmul.bf16.gmra.mxu0 %v2874_v12  ;;  %4218 = vst [vmem:[#allocation50_spill] sm:$0xff] %v4073_v46 }
 0x205   : > { %v1211_v59 = vpop.f32.mrf.mxu2  ;;  %v1566_v5 = vpop.f32.mrf.mxu1 }
 0x20c   : > { %1312 = vmatmul.bf16.gmra.mxu3 %v2851_v0 }
 0x20d   : > { %v1213_v58 = vpop.f32.mrf.mxu2  ;;  %v1568_v51 = vpop.f32.mrf.mxu1 }
 0x212   : > { %1473 = vmatmul.bf16.gmra.mxu0 %v2875_v16 }
 0x215   : > { %v1571_v22 = vpop.f32.mrf.mxu1 }
 0x21c   : > { %1317 = vmatmul.bf16.gmra.mxu3 %v2852_v20  ;;  %v1216_v20 = vpop.f32.mrf.mxu2 }
 0x222   : > { %1478 = vmatmul.bf16.gmra.mxu0 %v2876_v23 }
 0x224   : > { %v4078_v35 = vpop.f32.mrf.mxu2 }
 0x22c   : > { %1322 = vmatmul.bf16.gmra.mxu3 %v2853_v21 }
 0x232   : > { %1483 = vmatmul.bf16.gmra.mxu0 %v2877_v34 }
 0x23c   : > { %1327 = vmatmul.bf16.gmra.mxu3 %v2854_v10  ;;  %v4080_v10 = vpop.f32.mrf.mxu1 }
 0x242   : > { %1488 = vmatmul.bf16.gmra.mxu0 %v2878_v41 }
 0x24c   : > { %1332 = vmatmul.bf16.gmra.mxu3 %v2855_v8 }
 0x252   : > { %1493 = vmatmul.bf16.gmra.mxu0 %v2879_v49 }
 0x25c   : > { %1337 = vmatmul.bf16.gmra.mxu3 %v2856_v3 }
 0x262   : > { %1498 = vmatmul.bf16.gmra.mxu0 %v2880_v56 }
 0x26f   : > { %v1303_v11 = vpop.f32.mrf.mxu3  ;;  %v1464_v50 = vpop.f32.mrf.mxu0 }
 0x270   : > { %v1304_v12 = vadd.f32 %v1303_v11, %v1206_v26  ;;  %v1562_v33 = vadd.f32 %v1561_v60, %v1464_v50 }
 0x272   : > { %v4083_v39 = vadd.f32 %v1562_v33, %v3998_v55  ;;  %v4096_v56 = vadd.f32 %v1304_v12, %v4002_v40 }
 0x274   : > { %4220 = vst [vmem:[#allocation52_spill] sm:$0xff] %v4083_v39  ;;  %v1940_v49 = vmul.f32 %v4083_v39, %v4083_v39  ;;  %v1639_v40 = vmul.f32 %v4096_v56, %v4096_v56 }
 0x275   : > { %4222 = vst [vmem:[#allocation54_spill] sm:$0xff] %v4096_v56 }
 0x277   : > { %v1305_v0 = vpop.f32.mrf.mxu3  ;;  %v1466_v13 = vpop.f32.mrf.mxu0 }
 0x278   : > { %v1306_v16 = vadd.f32 %v1305_v0, %v1208_v30  ;;  %v1564_v18 = vadd.f32 %v1563_v4, %v1466_v13 }
 0x27a   : > { %v4076_v34 = vadd.f32 %v1564_v18, %v4000_v38  ;;  %v4091_v26 = vadd.f32 %v1306_v16, %v4006_v6 }
 0x27c   : > { %4219 = vst [vmem:[#allocation51_spill] sm:$0xff] %v4076_v34  ;;  %v1941_v8 = vmul.f32 %v4076_v34, %v4076_v34  ;;  %v1918_v3 = vadd.f32 %v4076_v34, %v4083_v39  ;;  %v1640_v6 = vmul.f32 %v4091_v26, %v4091_v26  ;;  %v1617_v12 = vadd.f32 %v4091_v26, %v4096_v56 }
 0x27d   : > { %4221 = vst [vmem:[#allocation53_spill] sm:$0xff] %v4091_v26 }
 0x27e   : > { %v1655_v16 = vadd.f32 %v1640_v6, %v1639_v40 }
 0x27f   : > { %v1308_v23 = vpop.f32.mrf.mxu3  ;;  %v1469_v27 = vpop.f32.mrf.mxu0 }
 0x280   : > { %v1309_v21 = vadd.f32 %v1308_v23, %v1211_v59  ;;  %v1567_v29 = vadd.f32 %v1566_v5, %v1469_v27  ;;  %v1956_v5 = vadd.f32 %v1941_v8, %v1940_v49 }
 0x282   : > { %v1603_v41 = vadd.f32 %v1567_v29, %v4004_v45  ;;  %v4099_v45 = vadd.f32 %v1309_v21, %v4017_v61 }
 0x284   : > { %v1942_v30 = vmul.f32 %v1603_v41, %v1603_v41  ;;  %4223 = vst [vmem:[#allocation55_spill] sm:$0xff] %v4099_v45  ;;  %v1919_v59 = vadd.f32 %v1918_v3, %v1603_v41  ;;  %v1641_v61 = vmul.f32 %v4099_v45, %v4099_v45 }
 0x286   : > { %v1957_v33 = vadd.f32 %v1956_v5, %v1942_v30  ;;  %v1656_v41 = vadd.f32 %v1655_v16, %v1641_v61 }
 0x287   : > { %v1310_v38 = vpop.f32.mrf.mxu3  ;;  %v1471_v60 = vpop.f32.mrf.mxu0 }
 0x288   : > { %v1311_v4 = vadd.f32 %v1310_v38, %v1213_v58  ;;  %v1569_v55 = vadd.f32 %v1568_v51, %v1471_v60  ;;  %v1221_v58 = vpop.f32.mrf.mxu2  ;;  %v1576_v51 = vpop.f32.mrf.mxu1 }
 0x28a   : > { %v1604_v11 = vadd.f32 %v1569_v55, %v4010_v62  ;;  %v1346_v50 = vadd.f32 %v1311_v4, %v4027_v15  ;;  %v1618_v15 = vadd.f32 %v1617_v12, %v4099_v45 }
 0x28c   : > { %v1920_v0 = vadd.f32 %v1919_v59, %v1604_v11  ;;  %v1943_v13 = vmul.f32 %v1604_v11, %v1604_v11  ;;  %v1642_v18 = vmul.f32 %v1346_v50, %v1346_v50  ;;  %v1619_v8 = vadd.f32 %v1618_v15, %v1346_v50 }
 0x28e   : > { %v1958_v62 = vadd.f32 %v1957_v33, %v1943_v13  ;;  %v1657_v60 = vadd.f32 %v1656_v41, %v1642_v18 }
 0x28f   : > { %v1313_v23 = vpop.f32.mrf.mxu3  ;;  %v1474_v27 = vpop.f32.mrf.mxu0 }
 0x290   : > { %v1314_v21 = vadd.f32 %v1313_v23, %v1216_v20  ;;  %v1572_v29 = vadd.f32 %v1571_v22, %v1474_v27  ;;  %v1223_v11 = vpop.f32.mrf.mxu2  ;;  %v1578_v6 = vpop.f32.mrf.mxu1 }
 0x292   : > { %v1347_v49 = vadd.f32 %v1314_v21, %v4033_v24  ;;  %v1605_v38 = vadd.f32 %v1572_v29, %v4021_v52 }
 0x294   : > { %v1620_v3 = vadd.f32 %v1619_v8, %v1347_v49  ;;  %v1643_v30 = vmul.f32 %v1347_v49, %v1347_v49  ;;  %v1921_v4 = vadd.f32 %v1920_v0, %v1605_v38  ;;  %v1944_v55 = vmul.f32 %v1605_v38, %v1605_v38 }
 0x296   : > { %v1658_v59 = vadd.f32 %v1657_v60, %v1643_v30  ;;  %v1959_v5 = vadd.f32 %v1958_v62, %v1944_v55 }
 0x297   : > { %v1315_v33 = vpop.f32.mrf.mxu3  ;;  %v1476_v13 = vpop.f32.mrf.mxu0 }
 0x298   : > { %v1226_v22 = vpop.f32.mrf.mxu2  ;;  %v1581_v61 = vpop.f32.mrf.mxu1  ;;  %v1316_v30 = vadd.f32 %v1315_v33, %v4078_v35  ;;  %v1574_v55 = vadd.f32 %v4080_v10, %v1476_v13 }
 0x29a   : > { %v1348_v39 = vadd.f32 %v1316_v30, %v4037_v43  ;;  %v1606_v45 = vadd.f32 %v1574_v55, %v4029_v37 }
 0x29c   : > { %v1644_v32 = vmul.f32 %v1348_v39, %v1348_v39  ;;  %v1945_v2 = vmul.f32 %v1606_v45, %v1606_v45  ;;  %v1621_v13 = vadd.f32 %v1620_v3, %v1348_v39 }
 0x29f   : > { %v1318_v40 = vpop.f32.mrf.mxu3  ;;  %v1479_v20 = vpop.f32.mrf.mxu0 }
 0x2a0   : > { %v1228_v24 = vpop.f32.mrf.mxu2  ;;  %v1583_v16 = vpop.f32.mrf.mxu1  ;;  %v1319_v9 = vadd.f32 %v1318_v40, %v1221_v58  ;;  %v1577_v34 = vadd.f32 %v1576_v51, %v1479_v20  ;;  %v1659_v40 = vadd.f32 %v1658_v59, %v1644_v32  ;;  %v1922_v20 = vadd.f32 %v1921_v4, %v1606_v45 }
 0x2a2   : > { %v1349_v1 = vadd.f32 %v1319_v9, %v4041_v53  ;;  %v1607_v47 = vadd.f32 %v1577_v34, %v4031_v7  ;;  %v1960_v9 = vadd.f32 %v1959_v5, %v1945_v2 }
 0x2a4   : > { %v1645_v51 = vmul.f32 %v1349_v1, %v1349_v1  ;;  %v1946_v37 = vmul.f32 %v1607_v47, %v1607_v47 }
 0x2a7   : > { %v1320_v50 = vpop.f32.mrf.mxu3  ;;  %v1481_v12 = vpop.f32.mrf.mxu0 }
 0x2a8   : > { %v1231_v23 = vpop.f32.mrf.mxu2  ;;  %v1586_v27 = vpop.f32.mrf.mxu1  ;;  %v1321_v26 = vadd.f32 %v1320_v50, %v1223_v11  ;;  %v1579_v56 = vadd.f32 %v1578_v6, %v1481_v12  ;;  %v1923_v50 = vadd.f32 %v1922_v20, %v1607_v47 }
 0x2aa   : > { %v1350_v58 = vadd.f32 %v1321_v26, %v4045_v19  ;;  %v1608_v43 = vadd.f32 %v1579_v56, %v4035_v63  ;;  %v1660_v56 = vadd.f32 %v1659_v40, %v1645_v51  ;;  %v4226_v51 = vld [vmem:[#allocation45_spill] sm:$0xff] }
 0x2ac   : > { %v1646_v12 = vmul.f32 %v1350_v58, %v1350_v58  ;;  %v1947_v19 = vmul.f32 %v1608_v43, %v1608_v43  ;;  %v1924_v2 = vadd.f32 %v1923_v50, %v1608_v43 }
 0x2ae   : > { %v1661_v47 = vadd.f32 %v1660_v56, %v1646_v12 }
 0x2af   : > { %v1323_v52 = vpop.f32.mrf.mxu3  ;;  %v1484_v18 = vpop.f32.mrf.mxu0 }
 0x2b0   : > { %v1233_v21 = vpop.f32.mrf.mxu2  ;;  %v1588_v62 = vpop.f32.mrf.mxu1  ;;  %v1324_v28 = vadd.f32 %v1323_v52, %v1226_v22  ;;  %v1582_v35 = vadd.f32 %v1581_v61, %v1484_v18  ;;  %v1622_v61 = vadd.f32 %v1621_v13, %v1349_v1  ;;  %v1961_v52 = vadd.f32 %v1960_v9, %v1946_v37  ;;  %v4227_v9 = vld [vmem:[#allocation49_spill] sm:$0xff] }
 0x2b2   : > { %v1351_v7 = vadd.f32 %v1324_v28, %v4051_v54  ;;  %v1609_v53 = vadd.f32 %v1582_v35, %v4039_v36  ;;  %v1623_v39 = vadd.f32 %v1622_v61, %v1350_v58  ;;  %v1962_v4 = vadd.f32 %v1961_v52, %v1947_v19 }
 0x2b4   : > { %v1647_v28 = vmul.f32 %v1351_v7, %v1351_v7  ;;  %v1948_v36 = vmul.f32 %v1609_v53, %v1609_v53  ;;  %v1925_v18 = vadd.f32 %v1924_v2, %v1609_v53  ;;  %v4228_v53 = vld [vmem:[#allocation46_spill] sm:$0xff] }
 0x2b7   : > { %v1325_v0 = vpop.f32.mrf.mxu3  ;;  %v1486_v15 = vpop.f32.mrf.mxu0 }
 0x2b8   : > { %v1236_v38 = vpop.f32.mrf.mxu2  ;;  %v1591_v60 = vpop.f32.mrf.mxu1  ;;  %v1326_v11 = vadd.f32 %v1325_v0, %v1228_v24  ;;  %v1584_v6 = vadd.f32 %v1583_v16, %v1486_v15  ;;  %v1624_v16 = vadd.f32 %v1623_v39, %v1351_v7 }
 0x2ba   : > { %v1352_v24 = vadd.f32 %v1326_v11, %v4055_v31  ;;  %v1610_v32 = vadd.f32 %v1584_v6, %v4043_v17 }
 0x2bc   : > { %v1949_v31 = vmul.f32 %v1610_v32, %v1610_v32 }
 0x2bf   : > { %v1328_v29 = vpop.f32.mrf.mxu3  ;;  %v1489_v41 = vpop.f32.mrf.mxu0 }
 0x2c0   : > { %v1238_v33 = vpop.f32.mrf.mxu2  ;;  %v1593_v10 = vpop.f32.mrf.mxu1  ;;  %v1329_v34 = vadd.f32 %v1328_v29, %v1231_v23  ;;  %v1587_v22 = vadd.f32 %v1586_v27, %v1489_v41  ;;  %v1648_v23 = vmul.f32 %v1352_v24, %v1352_v24  ;;  %v1662_v29 = vadd.f32 %v1661_v47, %v1647_v28 }
 0x2c2   : > { %v1353_v3 = vadd.f32 %v1329_v34, %v4059_v57  ;;  %v1611_v1 = vadd.f32 %v1587_v22, %v4047_v14  ;;  %v1963_v57 = vadd.f32 %v1962_v4, %v1948_v36  ;;  %v1663_v55 = vadd.f32 %v1662_v29, %v1648_v23 }
 0x2c4   : > { %v1649_v41 = vmul.f32 %v1353_v3, %v1353_v3  ;;  %v1950_v14 = vmul.f32 %v1611_v1, %v1611_v1  ;;  %v1964_v35 = vadd.f32 %v1963_v57, %v1949_v31  ;;  %v4230_v31 = vld [vmem:[#allocation47_spill] sm:$0xff] }
 0x2c6   : > { %v1664_v6 = vadd.f32 %v1663_v55, %v1649_v41  ;;  %v1965_v40 = vadd.f32 %v1964_v35, %v1950_v14 }
 0x2c7   : > { %v1330_v8 = vpop.f32.mrf.mxu3  ;;  %v1491_v49 = vpop.f32.mrf.mxu0 }
 0x2c8   : > { %v1331_v45 = vadd.f32 %v1330_v8, %v1233_v21  ;;  %v1589_v54 = vadd.f32 %v1588_v62, %v1491_v49  ;;  %v1241_v27 = vpop.f32.mrf.mxu2  ;;  %v1596_v17 = vpop.f32.mrf.mxu1  ;;  %v1625_v8 = vadd.f32 %v1624_v16, %v1352_v24  ;;  %v1926_v49 = vadd.f32 %v1925_v18, %v1610_v32  ;;  %v4229_v18 = vld [vmem:[#allocation50_spill] sm:$0xff] }
 0x2ca   : > { %v1354_v0 = vadd.f32 %v1331_v45, %v4063_v42  ;;  %v1612_v15 = vadd.f32 %v1589_v54, %v4049_v25  ;;  %v1626_v11 = vadd.f32 %v1625_v8, %v1353_v3  ;;  %v1927_v13 = vadd.f32 %v1926_v49, %v1611_v1 }
 0x2cc   : > { %v1650_v43 = vmul.f32 %v1354_v0, %v1354_v0  ;;  %v1951_v25 = vmul.f32 %v1612_v15, %v1612_v15  ;;  %v1627_v22 = vadd.f32 %v1626_v11, %v1354_v0  ;;  %v1928_v61 = vadd.f32 %v1927_v13, %v1612_v15 }
 0x2ce   : > { %v1665_v50 = vadd.f32 %v1664_v6, %v1650_v43  ;;  %v1966_v12 = vadd.f32 %v1965_v40, %v1951_v25 }
 0x2cf   : > { %v1333_v44 = vpop.f32.mrf.mxu3  ;;  %v1494_v46 = vpop.f32.mrf.mxu0 }
 0x2d0   : > { %v1334_v59 = vadd.f32 %v1333_v44, %v1236_v38  ;;  %v1592_v5 = vadd.f32 %v1591_v60, %v1494_v46  ;;  %v4224_v46 = vld [vmem:[#allocation44_spill] sm:$0xff]  ;;  %v1243_v52 = vpop.f32.mrf.mxu2  ;;  %v1598_v24 = vpop.f32.mrf.mxu1 }
 0x2d2   : > { %v1355_v44 = vadd.f32 %v1334_v59, %v4067_v48  ;;  %v1613_v38 = vadd.f32 %v1592_v5, %v4224_v46 }
 0x2d4   : > { %v1651_v20 = vmul.f32 %v1355_v44, %v1355_v44  ;;  %v1952_v48 = vmul.f32 %v1613_v38, %v1613_v38  ;;  %v1929_v56 = vadd.f32 %v1928_v61, %v1613_v38 }
 0x2d6   : > { %v1666_v32 = vadd.f32 %v1665_v50, %v1651_v20  ;;  %v1967_v39 = vadd.f32 %v1966_v12, %v1952_v48 }
 0x2d7   : > { %v1335_v26 = vpop.f32.mrf.mxu3  ;;  %v1496_v63 = vpop.f32.mrf.mxu0 }
 0x2d8   : > { %v1336_v21 = vadd.f32 %v1335_v26, %v1238_v33  ;;  %v1594_v62 = vadd.f32 %v1593_v10, %v1496_v63  ;;  %v4225_v33 = vld [vmem:[#allocation48_spill] sm:$0xff]  ;;  %v1628_v63 = vadd.f32 %v1627_v22, %v1355_v44 }
 0x2da   : > { %v1356_v10 = vadd.f32 %v1336_v21, %v4225_v33  ;;  %v1614_v37 = vadd.f32 %v1594_v62, %v4226_v51 }
 0x2dc   : > { %v1652_v19 = vmul.f32 %v1356_v10, %v1356_v10  ;;  %v1953_v26 = vmul.f32 %v1614_v37, %v1614_v37  ;;  %v1629_v36 = vadd.f32 %v1628_v63, %v1356_v10  ;;  %v1930_v3 = vadd.f32 %v1929_v56, %v1614_v37 }
 0x2de   : > { %v1667_v4 = vadd.f32 %v1666_v32, %v1652_v19  ;;  %v1968_v59 = vadd.f32 %v1967_v39, %v1953_v26 }
 0x2df   : > { %v1338_v60 = vpop.f32.mrf.mxu3  ;;  %v1499_v30 = vpop.f32.mrf.mxu0 }
 0x2e0   : > { %v1339_v58 = vadd.f32 %v1338_v60, %v1241_v27  ;;  %v1597_v42 = vadd.f32 %v1596_v17, %v1499_v30 }
 0x2e2   : > { %v1357_v7 = vadd.f32 %v1339_v58, %v4227_v9  ;;  %v1615_v34 = vadd.f32 %v1597_v42, %v4228_v53 }
 0x2e4   : > { %v1653_v2 = vmul.f32 %v1357_v7, %v1357_v7  ;;  %v1954_v45 = vmul.f32 %v1615_v34, %v1615_v34  ;;  %v1630_v5 = vadd.f32 %v1629_v36, %v1357_v7  ;;  %v1931_v16 = vadd.f32 %v1930_v3, %v1615_v34 }
 0x2e6   : > { %v1668_v17 = vadd.f32 %v1667_v4, %v1653_v2  ;;  %v1969_v0 = vadd.f32 %v1968_v59, %v1954_v45 }
 0x2e7   : > { %v1340_v54 = vpop.f32.mrf.mxu3  ;;  %v1501_v28 = vpop.f32.mrf.mxu0 }
 0x2e8   : > { %v1341_v1 = vadd.f32 %v1340_v54, %v1243_v52  ;;  %v1599_v47 = vadd.f32 %v1598_v24, %v1501_v28  ;;  %v470_v28 = vld [vmem:[%s3712_s20] sm:$0xff] }
 0x2ea   : > { %v1358_v23 = vadd.f32 %v1341_v1, %v4229_v18  ;;  %v1616_v27 = vadd.f32 %v1599_v47, %v4230_v31  ;;  %v4231_v47 = vld [vmem:[#allocation54_spill] sm:$0xff] }
 0x2ec   : > { %v1631_v15 = vadd.f32 %v1630_v5, %v1358_v23  ;;  %v1654_v21 = vmul.f32 %v1358_v23, %v1358_v23  ;;  %v1932_v62 = vadd.f32 %v1931_v16, %v1616_v27  ;;  %v1955_v29 = vmul.f32 %v1616_v27, %v1616_v27  ;;  %v4232_v16 = vld [vmem:[#allocation53_spill] sm:$0xff]  ;;  %v4233_v23 = vld [vmem:[#allocation55_spill] sm:$0xff] }
 0x2ed   : > { %v1723_v5 = vperm.slane %v470_v28, 0 }
 0x2ee   : > { %v1632_v57 = vrot.slane %v1631_v15, 4  ;;  %v1669_v41 = vadd.f32 %v1668_v17, %v1654_v21  ;;  %v1933_v14 = vrot.slane %v1932_v62, 4  ;;  %v1970_v8 = vadd.f32 %v1969_v0, %v1955_v29 }
 0x2ef   : > { %v1740_v0 = vperm.slane %v470_v28, 1 }
 0x2f0   : > { %v1633_v49 = vadd.f32 %v1632_v57, %v1631_v15  ;;  %v1670_v44 = vrot.slane %v1669_v41, 4  ;;  %v1934_v46 = vadd.f32 %v1933_v14, %v1932_v62  ;;  %v1971_v38 = vrot.slane %v1970_v8, 4  ;;  %v4234_v15 = vld [vmem:[#allocation52_spill] sm:$0xff]  ;;  %v4235_v62 = vld [vmem:[#allocation51_spill] sm:$0xff] }
 0x2f2   : > { %v1634_v60 = vrot.slane %v1633_v49, 2  ;;  %v1671_v30 = vadd.f32 %v1670_v44, %v1669_v41  ;;  %v1935_v55 = vrot.slane %v1934_v46, 2  ;;  %v1972_v35 = vadd.f32 %v1971_v38, %v1970_v8 }
 0x2f4   : > { %v1635_v58 = vadd.f32 %v1634_v60, %v1633_v49  ;;  %v1672_v42 = vrot.slane %v1671_v30, 2  ;;  %v1936_v43 = vadd.f32 %v1935_v55, %v1934_v46  ;;  %v1973_v25 = vrot.slane %v1972_v35, 2 }
 0x2f6   : > { %v1636_v33 = vrot.slane %v1635_v58, 1  ;;  %v1673_v10 = vadd.f32 %v1672_v42, %v1671_v30  ;;  %v1937_v51 = vrot.slane %v1936_v43, 1  ;;  %v1974_v37 = vadd.f32 %v1973_v25, %v1972_v35 }
 0x2f8   : > { %v1637_v11 = vadd.f32 %v1636_v33, %v1635_v58  ;;  %v1674_v6 = vrot.slane %v1673_v10, 1  ;;  %v1938_v13 = vadd.f32 %v1937_v51, %v1936_v43  ;;  %v1975_v40 = vrot.slane %v1974_v37, 1 }
 0x2fa   : > { %v1638_v20 = vmul.f32 0.041666668, %v1637_v11  ;;  %v1675_v48 = vadd.f32 %v1674_v6, %v1673_v10  ;;  %v1939_v9 = vmul.f32 0.0625, %v1938_v13  ;;  %v1976_v7 = vadd.f32 %v1975_v40, %v1974_v37 }
 0x2fc   : > { %v1676_v53 = vmul.f32 0.041666668, %v1675_v48  ;;  %v1677_v34 = vmul.f32 %v1638_v20, %v1638_v20  ;;  %v1977_v22 = vmul.f32 0.0625, %v1976_v7  ;;  %v1978_v61 = vmul.f32 %v1939_v9, %v1939_v9  ;;  %v4238_v48 = vld [vmem:[#allocation43_spill] sm:$0xff] }
 0x2fd   : > { %v1680_v4 = vsub.f32 %v4231_v47, %v1638_v20  ;;  %v1681_v18 = vsub.f32 %v4232_v16, %v1638_v20  ;;  %v1682_v31 = vsub.f32 %v4233_v23, %v1638_v20  ;;  %v1981_v21 = vsub.f32 %v4234_v15, %v1939_v9 }
 0x2fe   : > { %v1678_v50 = vsub.f32 %v1676_v53, %v1677_v34  ;;  %v1979_v12 = vsub.f32 %v1977_v22, %v1978_v61  ;;  %v1982_v29 = vsub.f32 %v4235_v62, %v1939_v9 }
 0x300   : > { %v1679_v19 = vmax.f32 %v1678_v50, 0.0  ;;  %v1980_v26 = vmax.f32 %v1979_v12, 0.0 }
 0x302   : > { %v1696_v63 = vadd.f32 1e-05, %v1679_v19  ;;  %v1997_v56 = vadd.f32 1e-05, %v1980_v26 }
 0x304   : > { %3079 = vrsqrt.f32 %v1696_v63  ;;  %vm1703_vm2 = vweird.f32 %v1696_v63  ;;  %vm2004_vm4 = vweird.f32 %v1997_v56 }
 0x305   : > { %3081 = vrsqrt.f32 %v1997_v56 }
 0x30a   : > { %v3080_v52 = vpop.eup %3079 }
 0x30b   : > { %v3082_v24 = vpop.eup %3081  ;;  %v1698_v32 = vmul.f32 %v3080_v52, %v1696_v63  ;;  %vm1704_vm0 = vweird.f32 %v3080_v52 }
 0x30c   : > { %v1999_v39 = vmul.f32 %v3082_v24, %v1997_v56  ;;  %vm2005_vm1 = vweird.f32 %v3082_v24  ;;  %vm1705_vm3 = vmor %vm1703_vm2, %vm1704_vm0 }
 0x30d   : > { %v1699_v2 = vmul.f32 %v3080_v52, %v1698_v32  ;;  %vm2006_vm5 = vmor %vm2004_vm4, %vm2005_vm1 }
 0x30e   : > { %v2000_v45 = vmul.f32 %v3082_v24, %v1999_v39 }
 0x30f   : > { %v1700_v54 = vmul.f32 0.5, %v1699_v2 }
 0x310   : > { %v2001_v36 = vmul.f32 0.5, %v2000_v45 }
 0x311   : > { %v1701_v3 = vsub.f32 1.5, %v1700_v54 }
 0x312   : > { %v2002_v1 = vsub.f32 1.5, %v2001_v36 }
 0x313   : > { %v1702_v59 = vmul.f32 %v3080_v52, %v1701_v3 }
 0x314   : > { %v2003_v27 = vmul.f32 %v3082_v24, %v2002_v1 }
 0x315   : > { %v1706_v17 = vsel %vm1705_vm3, %v3080_v52, %v1702_v59 }
 0x316   : > { %v1707_v57 = vmul.f32 %v1706_v17, %v1680_v4  ;;  %v1708_v41 = vmul.f32 %v1706_v17, %v1681_v18  ;;  %v1709_v14 = vmul.f32 %v1706_v17, %v1682_v31  ;;  %v2007_v8 = vsel %vm2006_vm5, %v3082_v24, %v2003_v27 }
 0x317   : > { %v2008_v49 = vmul.f32 %v2007_v8, %v1981_v21  ;;  %v2009_v44 = vmul.f32 %v2007_v8, %v1982_v29 }
 0x318   : > { %v1724_v46 = vmul.f32 %v1723_v5, %v1707_v57  ;;  %v1725_v38 = vmul.f32 %v1723_v5, %v1708_v41  ;;  %v1726_v60 = vmul.f32 %v1723_v5, %v1709_v14 }
 0x319   : > { %v2024_v30 = vmul.f32 %v2008_v49, %v1723_v5  ;;  %v2025_v55 = vmul.f32 %v2009_v44, %v1723_v5 }
 0x31a   : > { %v1741_v35 = vadd.f32 %v1740_v0, %v1724_v46  ;;  %v1742_v58 = vadd.f32 %v1740_v0, %v1725_v38  ;;  %v1743_v42 = vadd.f32 %v1740_v0, %v1726_v60 }
 0x31b   : > { %v2040_v43 = vadd.f32 %v2024_v30, %v1740_v0  ;;  %v2041_v25 = vadd.f32 %v2025_v55, %v1740_v0 }
 0x31c   : > { %vm1757_vm6 = vcmp.ge.f32.partialorder %v1741_v35, 0.0  ;;  %vm1758_vm7 = vcmp.ge.f32.partialorder %v1742_v58, 0.0  ;;  %vm1759_vm8 = vcmp.ge.f32.partialorder %v1743_v42, 0.0  ;;  %v1773_v33 = vmul.f32 0.01, %v1741_v35 }
 0x31d   : > { %v1774_v10 = vmul.f32 0.01, %v1742_v58  ;;  %v1775_v51 = vmul.f32 0.01, %v1743_v42  ;;  %vm2056_vm9 = vcmp.ge.f32.partialorder %v2040_v43, 0.0  ;;  %vm2057_vm10 = vcmp.ge.f32.partialorder %v2041_v25, 0.0 }
 0x31e   : > { %v1789_v37 = vsel %vm1757_vm6, %v1741_v35, %v1773_v33  ;;  %v2072_v11 = vmul.f32 0.01, %v2040_v43  ;;  %v2073_v6 = vmul.f32 0.01, %v2041_v25 }
 0x31f   : > { %v1790_v13 = vsel %vm1758_vm7, %v1742_v58, %v1774_v10  ;;  %v1791_v40 = vsel %vm1759_vm8, %v1743_v42, %v1775_v51 }
 0x320   : > { %v2884_v20 = vpack.c.bf16 %v1790_v13, %v1789_v37  ;;  %v2889_v9 = vpack.c.bf16 %v4238_v48, %v1791_v40  ;;  %v2088_v7 = vsel %vm2056_vm9, %v2040_v43, %v2072_v11  ;;  %v2089_v53 = vsel %vm2057_vm10, %v2041_v25, %v2073_v6 }
 0x321   : > { %v2924_v34 = vpack.c.bf16 %v2089_v53, %v2088_v7 }
 0x322   : > { %2885 = vst [vmem:[#allocation14] sm:$0xff] %v2884_v20  }
 0x323   : > { %2961 = vst [vmem:[#allocation14 + $0x8] sm:$0xff] %v2889_v9  }
 0x324   : > { %2925 = vst [vmem:[#allocation13] sm:$0xff] %v2924_v34   ;;  %3013 = dma.vmem_to_hbm [thread:$0]  (%p3030_p5), %s373_s7, 1024, %s2222_s25, [#allocation15], %s3480_s9, %s3480_s9, %s3481_s29  }
 0x325   : > { %3011 = dma.vmem_to_hbm [thread:$0]  (%p3030_p5), %s359_s18, 1024, %s2208_s12, [#allocation9], %s3480_s9, %s3480_s9, %s3481_s29  }
 0x326   : > { %3446 = dma.done.wait (%p3030_p5), [#allocation9], 1024  }
 0x327   : > { %3448 = vsyncadd (%p3030_p5), [#allocation9], 4294966272 }
 0x328   : > { %3450 = dma.done.wait (%p3030_p5), [#allocation15], 1024  }
 0x329   : > { %3452 = vsyncadd (%p3030_p5), [#allocation15], 4294966272 }
 0x32a PF: > { %s4239_s16 = sld [smem:[#allocation41_spill]]  ;;  %s4242_s13 = smov %s3459_s14 }
 0x32b   : > { %s4240_s26 = sld [smem:[#allocation40_spill]] }
 0x32c   : > { %s4241_s15 = sld [smem:[#allocation42_spill]] }
 0x330   : > { %p26_p7 = scmp.ge.s32.totalorder %s4239_s16, 4  }
 0x331   : > { %s4243_s14 = smov %s4240_s26 }
 0x332   :  { %28 = sbr.rel (!%p26_p7) target bundleno = 11 (0xb), region = 139 }
 0x337   :  { %2243 = vsyncpa [#allocation8], 1 }
 0x338   :  { %2245 = vsyncpa [#allocation8 + $0x1], 1 }
 0x339   :  { %2246 = vsyncpa [#allocation11], 1 }
 0x33a   :  { %2248 = vsyncpa [#allocation11 + $0x1], 1 }
 0x33b   :  { %2249 = vsyncpa [#allocation9], 1 }
 0x33c   :  { %2251 = vsyncpa [#allocation9 + $0x1], 1 }
 0x33d   :  { %2252 = vsyncpa [#allocation15], 1 }
 0x33e   :  { %2253 = vsyncmov [#allocation6] }
 0x341   :  { %s2254_s17 = vpop.sfrf %2253 }
 0x342   :  { %p2777_p8 = scmp.ne.s32.totalorder %s2254_s17, 0 }
 0x344   :  { %2258 = shalt.err (%p2777_p8)  }
 0x345   :  { %2260 = vsyncmov [#allocation6 + $0x1] }
 0x348   :  { %s2261_s28 = vpop.sfrf %2260 }
 0x349   :  { %p2778_p10 = scmp.ne.s32.totalorder %s2261_s28, 0 }
 0x34b   :  { %2265 = shalt.err (%p2778_p10)  }
 0x34c   :  { %2267 = vsyncmov [#allocation6 + $0x2] }
 0x34f   :  { %s2268_s18 = vpop.sfrf %2267 }
 0x350   :  { %p2779_p6 = scmp.ne.s32.totalorder %s2268_s18, 0 }
 0x352   :  { %2272 = shalt.err (%p2779_p6)  }
 0x353   :  { %2274 = vsyncmov [#allocation6 + $0x3] }
 0x356   :  { %s2275_s0 = vpop.sfrf %2274 }
 0x357   :  { %p2780_p1 = scmp.ne.s32.totalorder %s2275_s0, 0 }
 0x359   :  { %2279 = shalt.err (%p2780_p1)  }
 0x35a   :  { %2281 = vsyncmov [#allocation6 + $0x4] }
 0x35d   :  { %s2282_s1 = vpop.sfrf %2281 }
 0x35e   :  { %p2781_p2 = scmp.ne.s32.totalorder %s2282_s1, 0 }
 0x360   :  { %2286 = shalt.err (%p2781_p2)  }
 0x361   :  { %2288 = vsyncmov [#allocation6 + $0x5] }
 0x364   :  { %s2289_s2 = vpop.sfrf %2288 }
 0x365   :  { %p2782_p3 = scmp.ne.s32.totalorder %s2289_s2, 0 }
 0x367   :  { %2293 = shalt.err (%p2782_p3)  }

</bundles_post_ra>
